<compile_context>
chip_gen: v7x
topology: tpu7x:2x2x1
jax: 0.10.0
libtpu: 0.0.40
codegen_flags: <defaults>
</compile_context>

<pallas_src>
import jax
import jax.numpy as jnp
from jax.experimental import pallas as pl
from jax.experimental.pallas import tpu as pltpu


# ---------------------------------------------------------------------------
# Fused per-image forward kernel (grid axis = batch)
# ---------------------------------------------------------------------------
def _lenet_kernel(x_ref, w1_ref, b1_ref, w2_ref, b2_ref, g_ref,
                  wf1_ref, fb1_ref, wf2_ref, fb2_ref, wf3_ref, fb3_ref,
                  out_ref):
    f32, bf16 = jnp.float32, jnp.bfloat16
    NP = 192                                   # pooled / conv2 grid: 12 lines x 16

    # ---- conv1: single MXU matmul over the 25-tap im2col (K=25 padded to 32) ----
    c1 = jnp.dot(x_ref[...], w1_ref[...], preferred_element_type=f32)
    c1 = jnp.maximum(c1 + b1_ref[...], 0.0)                       # (768, 128) f32

    # ---- maxpool1: rows were laid out (di, dj, i, j), so the 2x2/stride-2 pool
    #      is the max of the four contiguous quarter blocks (no rolls, no gather).
    p1 = jnp.maximum(jnp.maximum(c1[0:192], c1[192:384]),
                     jnp.maximum(c1[384:576], c1[576:768]))       # (192, 128) f32

    # ---- conv2: pack 5 horizontal taps x 6 channels into lanes 0..29 ("him"),
    #      then one matmul per vertical tap (5 matmuls of K=30-in-128).
    lane = jax.lax.broadcasted_iota(jnp.int32, (NP, 128), 1)
    him = jnp.where(lane < 6, p1, 0.0)
    for kj in range(1, 5):
        sel = (lane >= 6 * kj) & (lane < 6 * kj + 6)
        him = him + jnp.where(sel, pltpu.roll(p1, NP - kj, 0), 0.0)

    c2 = jnp.dot(him.astype(bf16), w2_ref[0], preferred_element_type=f32)
    for ki in range(1, 5):
        shifted = pltpu.roll(him, NP - 16 * ki, 0)                # whole-line shift
        c2 = c2 + jnp.dot(shifted.astype(bf16), w2_ref[ki],
                          preferred_element_type=f32)
    c2 = jnp.maximum(c2 + b2_ref[...], 0.0)                       # (192, 128) f32

    # ---- maxpool2: max of 4 neighbours via two small rolls ----
    t = jnp.maximum(c2, pltpu.roll(c2, NP - 1, 0))                # (r, r+1)
    u = jnp.maximum(t, pltpu.roll(t, NP - 16, 0))                 # (+16, +17)

    # ---- flatten: gather the 16 pooled spatial positions with one small matmul,
    #      then pack (position, channel) into two 128-lane halves using the x8
    #      output-channel replication baked into conv2's weights.
    pos = jnp.dot(g_ref[...], u.astype(bf16), preferred_element_type=f32)  # (16,128)
    lane8 = jax.lax.broadcasted_iota(jnp.int32, (8, 128), 1)
    row8 = jax.lax.broadcasted_iota(jnp.int32, (8, 128), 0)
    lo = row8 * 16
    keep = (lane8 >= lo) & (lane8 < lo + 16)                      # lane group == row
    half_a = jnp.sum(jnp.where(keep, pos[0:8], 0.0), axis=0, keepdims=True)
    half_b = jnp.sum(jnp.where(keep, pos[8:16], 0.0), axis=0, keepdims=True)

    # ---- fc1 (two K=128 chunks) + ReLU, fc2 + ReLU, fc3 ----
    a1 = (jnp.dot(half_a.astype(bf16), wf1_ref[0], preferred_element_type=f32)
          + jnp.dot(half_b.astype(bf16), wf1_ref[1], preferred_element_type=f32))
    a1 = jnp.maximum(a1 + fb1_ref[...], 0.0)
    a2 = jnp.maximum(jnp.dot(a1.astype(bf16), wf2_ref[...],
                             preferred_element_type=f32) + fb2_ref[...], 0.0)
    logits = (jnp.dot(a2.astype(bf16), wf3_ref[...],
                      preferred_element_type=f32) + fb3_ref[...])             # (1,128)
    out_ref[...] = jnp.broadcast_to(logits, (8, 128))[None]       # lane-dense store


# ---------------------------------------------------------------------------
# One-time, batch-independent weight repacking
# ---------------------------------------------------------------------------
def prepare_params(params):
    f32, bf16 = jnp.float32, jnp.bfloat16

    # conv1: (6,1,5,5) -> (32,128); row = ki*5+kj, col 6*g + c = w1[c,0,ki,kj]
    # (the 5 replicas g=0..4 feed conv2's horizontal-tap lane packing for free).
    w1 = params["conv1_w"].astype(f32)
    w1_taps = jnp.transpose(w1[:, 0], (1, 2, 0)).reshape(25, 6)
    W1p = jnp.zeros((32, 128), f32)
    b1p = jnp.zeros((1, 128), f32)
    for g in range(5):
        W1p = W1p.at[:25, 6 * g:6 * g + 6].set(w1_taps)
        b1p = b1p.at[0, 6 * g:6 * g + 6].set(params["conv1_b"].astype(f32))

    # conv2: (16,6,5,5) -> (5,128,128); per vertical tap ki: row = kj*6 + cin,
    # col = 16*g + cout (16 out-channels replicated x8 for the flatten repack).
    w2 = params["conv2_w"].astype(f32)
    W2p = jnp.zeros((5, 128, 128), f32)
    b2p = jnp.zeros((1, 128), f32)
    for ki in range(5):
        sub = jnp.transpose(w2[:, :, ki, :], (2, 1, 0)).reshape(30, 16)
        for g in range(8):
            W2p = W2p.at[ki, :30, 16 * g:16 * g + 16].set(sub)
    for g in range(8):
        b2p = b2p.at[0, 16 * g:16 * g + 16].set(params["conv2_b"].astype(f32))

    # pool2 gather: row p = i3*4 + j3 picks conv2-grid row 32*i3 + 2*j3.
    G = jnp.zeros((16, 192), f32)
    for i3 in range(4):
        for j3 in range(4):
            G = G.at[i3 * 4 + j3, 32 * i3 + 2 * j3].set(1.0)

    # fc1: PyTorch flatten order is (c, i3, j3); our flat halves use lane
    # 16*p8 + c for spatial p = p8 (+8 for the second half).
    fc1 = params["fc1_w"].astype(f32).reshape(120, 16, 16)       # (o, c, p)
    Wf1 = jnp.zeros((2, 128, 128), f32)
    for half in range(2):
        blk = jnp.transpose(fc1[:, :, 8 * half:8 * half + 8], (2, 1, 0))  # (p8,c,o)
        Wf1 = Wf1.at[half, :128, :120].set(blk.reshape(128, 120))

    fb1 = jnp.zeros((1, 128), f32).at[0, :120].set(params["fc1_b"].astype(f32))
    Wf2 = jnp.zeros((128, 128), f32).at[:120, :84].set(params["fc2_w"].T.astype(f32))
    fb2 = jnp.zeros((1, 128), f32).at[0, :84].set(params["fc2_b"].astype(f32))
    Wf3 = jnp.zeros((128, 128), f32).at[:84, :10].set(params["fc3_w"].T.astype(f32))
    fb3 = jnp.zeros((1, 128), f32).at[0, :10].set(params["fc3_b"].astype(f32))

    return {
        "w1": W1p.astype(bf16), "b1": b1p,
        "w2": W2p.astype(bf16), "b2": b2p,
        "G": G.astype(bf16),
        "wf1": Wf1.astype(bf16), "fb1": fb1,
        "wf2": Wf2.astype(bf16), "fb2": fb2,
        "wf3": Wf3.astype(bf16), "fb3": fb3,
    }


# ---------------------------------------------------------------------------
# Wrapper: tiny im2col for conv1 (25 taps in lanes), pool-phase-outermost rows
# ---------------------------------------------------------------------------
def _build_conv1_im2col(x):
    B = x.shape[0]
    img = x.reshape(B, 28, 28).astype(jnp.float32)
    patches = jnp.stack(
        [img[:, ki:ki + 24, kj:kj + 24] for ki in range(5) for kj in range(5)],
        axis=-1)                                           # (B,24,24,25)
    p = patches.reshape(B, 12, 2, 12, 2, 25)               # (b, i, di, j, dj, t)
    p = jnp.transpose(p, (0, 2, 4, 1, 3, 5))               # (b, di, dj, i, j, t)
    p = jnp.pad(p, ((0, 0), (0, 0), (0, 0), (0, 0), (0, 4), (0, 0)))  # j: 12->16
    p = p.reshape(B * 768, 25)
    p = jnp.pad(p, ((0, 0), (0, 7)))                       # taps: 25 -> 32 lanes
    return p.astype(jnp.bfloat16)


def _const_spec(shape):
    zeros = (0,) * len(shape)
    return pl.BlockSpec(shape, lambda b, _z=zeros: _z)


@jax.jit
def lenet_forward(x, prepped):
    B = x.shape[0]
    xs = _build_conv1_im2col(x)                            # (B*768, 32) bf16

    flops = 2 * B * (768 * 32 * 128 + 5 * 192 * 128 * 128
                     + 16 * 192 * 128 + 4 * 128 * 128)
    bytes_accessed = (xs.size * xs.dtype.itemsize
                      + sum(int(v.size) * v.dtype.itemsize for v in prepped.values())
                      + B * 8 * 128 * 4)

    out = pl.pallas_call(
        _lenet_kernel,
        out_shape=jax.ShapeDtypeStruct((B, 8, 128), jnp.float32),
        grid=(B,),
        in_specs=[
            pl.BlockSpec((768, 32), lambda b: (b, 0)),     # per-image im2col block
            _const_spec((32, 128)), _const_spec((1, 128)),
            _const_spec((5, 128, 128)), _const_spec((1, 128)),
            _const_spec((16, 192)),
            _const_spec((2, 128, 128)), _const_spec((1, 128)),
            _const_spec((128, 128)), _const_spec((1, 128)),
            _const_spec((128, 128)), _const_spec((1, 128)),
        ],
        out_specs=pl.BlockSpec((1, 8, 128), lambda b: (b, 0, 0)),
        compiler_params=pltpu.CompilerParams(
            dimension_semantics=("parallel",)),
        cost_estimate=pl.CostEstimate(flops=flops, transcendentals=0,
                                      bytes_accessed=bytes_accessed),
    )(xs, prepped["w1"], prepped["b1"], prepped["w2"], prepped["b2"],
      prepped["G"], prepped["wf1"], prepped["fb1"], prepped["wf2"],
      prepped["fb2"], prepped["wf3"], prepped["fb3"])
    return out[:, 0, :10]


# ---------------------------------------------------------------------------
# Deterministic synthetic parameters + pure-JAX f32 reference
# ---------------------------------------------------------------------------
def init_params():
    key = jax.random.PRNGKey(42)
    ks = jax.random.split(key, 10)

    def normal(k, shape, scale):
        return (scale * jax.random.normal(k, shape)).astype(jnp.float32)

    return {
        "conv1_w": normal(ks[0], (6, 1, 5, 5), 0.2),
        "conv1_b": normal(ks[1], (6,), 0.1),
        "conv2_w": normal(ks[2], (16, 6, 5, 5), 0.08),
        "conv2_b": normal(ks[3], (16,), 0.1),
        "fc1_w": normal(ks[4], (120, 256), 0.06),   # PyTorch Linear: (out, in)
        "fc1_b": normal(ks[5], (120,), 0.1),
        "fc2_w": normal(ks[6], (84, 120), 0.09),
        "fc2_b": normal(ks[7], (84,), 0.1),
        "fc3_w": normal(ks[8], (10, 84), 0.1),
        "fc3_b": normal(ks[9], (10,), 0.1),
    }


def lenet_reference(x, params):
    f32 = jnp.float32

    def conv(z, w, b):
        out = jax.lax.conv_general_dilated(
            z.astype(f32), w.astype(f32), window_strides=(1, 1), padding="VALID",
            dimension_numbers=("NCHW", "OIHW", "NCHW"))
        return out + b.reshape(1, -1, 1, 1)

    def pool(z):
        Bq, C, H, W = z.shape
        return z.reshape(Bq, C, H // 2, 2, W // 2, 2).max(axis=(3, 5))

    h = pool(jax.nn.relu(conv(x, params["conv1_w"], params["conv1_b"])))
    h = pool(jax.nn.relu(conv(h, params["conv2_w"], params["conv2_b"])))
    h = h.reshape(h.shape[0], -1)                           # NCHW flatten order
    h = jax.nn.relu(h @ params["fc1_w"].T + params["fc1_b"])
    h = jax.nn.relu(h @ params["fc2_w"].T + params["fc2_b"])
    return h @ params["fc3_w"].T + params["fc3_b"]


if __name__ == "__main__":
    params = init_params()
    x = jax.random.normal(jax.random.PRNGKey(0), (2, 1, 28, 28), dtype=jnp.float32)

    prepped = prepare_params(params)                        # one-time repacking
    logits = jax.block_until_ready(lenet_forward(x, prepped))

    assert logits.shape == (2, 10), logits.shape
    assert bool(jnp.all(jnp.isfinite(logits)))

    ref = lenet_reference(x, params)
    err = float(jnp.max(jnp.abs(logits - ref)))
    assert err < 0.25, f"max |kernel - f32 reference| = {err}"  # bf16-tolerant
    print("KERNEL_OK")
</pallas_src>

<mosaic_0001>
module attributes {stable_mosaic.version = 11 : i64} {
  func.func @_lenet_kernel(%arg0: i32, %arg1: memref<768x32xbf16, #tpu.memory_space<vmem>>, %arg2: memref<32x128xbf16, #tpu.memory_space<vmem>>, %arg3: memref<1x128xf32, #tpu.memory_space<vmem>>, %arg4: memref<5x128x128xbf16, #tpu.memory_space<vmem>>, %arg5: memref<1x128xf32, #tpu.memory_space<vmem>>, %arg6: memref<16x192xbf16, #tpu.memory_space<vmem>>, %arg7: memref<2x128x128xbf16, #tpu.memory_space<vmem>>, %arg8: memref<1x128xf32, #tpu.memory_space<vmem>>, %arg9: memref<128x128xbf16, #tpu.memory_space<vmem>>, %arg10: memref<1x128xf32, #tpu.memory_space<vmem>>, %arg11: memref<128x128xbf16, #tpu.memory_space<vmem>>, %arg12: memref<1x128xf32, #tpu.memory_space<vmem>>, %arg13: memref<1x8x128xf32, #tpu.memory_space<vmem>>) attributes {dimension_semantics = [#tpu.dimension_semantics<parallel>], iteration_bounds = array<i64: 2>, scalar_prefetch = 0 : i64, scratch_operands = 0 : i64, tpu.core_type = #tpu.core_type<tc>, window_params = [{transform_indices = @transform_0, window_bounds = array<i64: 768, 32>}, {pipeline_mode = #tpu.pipeline_mode<synchronous>, transform_indices = @transform_1, window_bounds = array<i64: 32, 128>}, {pipeline_mode = #tpu.pipeline_mode<synchronous>, transform_indices = @transform_2, window_bounds = array<i64: 1, 128>}, {pipeline_mode = #tpu.pipeline_mode<synchronous>, transform_indices = @transform_3, window_bounds = array<i64: 5, 128, 128>}, {pipeline_mode = #tpu.pipeline_mode<synchronous>, transform_indices = @transform_4, window_bounds = array<i64: 1, 128>}, {pipeline_mode = #tpu.pipeline_mode<synchronous>, transform_indices = @transform_5, window_bounds = array<i64: 16, 192>}, {pipeline_mode = #tpu.pipeline_mode<synchronous>, transform_indices = @transform_6, window_bounds = array<i64: 2, 128, 128>}, {pipeline_mode = #tpu.pipeline_mode<synchronous>, transform_indices = @transform_7, window_bounds = array<i64: 1, 128>}, {pipeline_mode = #tpu.pipeline_mode<synchronous>, transform_indices = @transform_8, window_bounds = array<i64: 128, 128>}, {pipeline_mode = #tpu.pipeline_mode<synchronous>, transform_indices = @transform_9, window_bounds = array<i64: 1, 128>}, {pipeline_mode = #tpu.pipeline_mode<synchronous>, transform_indices = @transform_10, window_bounds = array<i64: 128, 128>}, {pipeline_mode = #tpu.pipeline_mode<synchronous>, transform_indices = @transform_11, window_bounds = array<i64: 1, 128>}, {transform_indices = @transform_12, window_bounds = array<i64: 1, 8, 128>}]} {
    %c0 = arith.constant 0 : index
    %c0_0 = arith.constant 0 : index
    %0 = vector.load %arg1[%c0, %c0_0] : memref<768x32xbf16, #tpu.memory_space<vmem>>, vector<768x32xbf16>
    %c0_1 = arith.constant 0 : index
    %c0_2 = arith.constant 0 : index
    %1 = vector.load %arg2[%c0_1, %c0_2] : memref<32x128xbf16, #tpu.memory_space<vmem>>, vector<32x128xbf16>
    %cst = arith.constant dense<0.000000e+00> : vector<768x128xf32>
    %2 = tpu.matmul %0, %1, %cst {dimension_numbers = #tpu.dot_dimension_numbers<[1], [0], [0], [1], [0, 0, 1, 1], [], []>} : vector<768x32xbf16>, vector<32x128xbf16>, vector<768x128xf32> -> vector<768x128xf32>
    %c0_3 = arith.constant 0 : index
    %c0_4 = arith.constant 0 : index
    %3 = vector.load %arg3[%c0_3, %c0_4] : memref<1x128xf32, #tpu.memory_space<vmem>>, vector<1x128xf32>
    %4 = vector.broadcast %3 : vector<1x128xf32> to vector<768x128xf32>
    %5 = arith.addf %2, %4 : vector<768x128xf32>
    %cst_5 = arith.constant 0.000000e+00 : f32
    %6 = vector.broadcast %cst_5 : f32 to vector<768x128xf32>
    %7 = arith.maximumf %5, %6 : vector<768x128xf32>
    %8 = vector.extract_strided_slice %7 {offsets = [0, 0], sizes = [192, 128], strides = [1, 1]} : vector<768x128xf32> to vector<192x128xf32>
    %9 = vector.extract_strided_slice %7 {offsets = [192, 0], sizes = [192, 128], strides = [1, 1]} : vector<768x128xf32> to vector<192x128xf32>
    %10 = arith.maximumf %8, %9 : vector<192x128xf32>
    %11 = vector.extract_strided_slice %7 {offsets = [384, 0], sizes = [192, 128], strides = [1, 1]} : vector<768x128xf32> to vector<192x128xf32>
    %12 = vector.extract_strided_slice %7 {offsets = [576, 0], sizes = [192, 128], strides = [1, 1]} : vector<768x128xf32> to vector<192x128xf32>
    %13 = arith.maximumf %11, %12 : vector<192x128xf32>
    %14 = arith.maximumf %10, %13 : vector<192x128xf32>
    %15 = tpu.iota {dimensions = array<i32: 1>} : vector<192x128xi32>
    %c6_i32 = arith.constant 6 : i32
    %16 = vector.broadcast %c6_i32 : i32 to vector<192x128xi32>
    %17 = arith.cmpi slt, %15, %16 : vector<192x128xi32>
    %cst_6 = arith.constant 0.000000e+00 : f32
    %18 = vector.broadcast %cst_6 : f32 to vector<192x128xf32>
    %19 = arith.select %17, %14, %18 : vector<192x128xi1>, vector<192x128xf32>
    %c6_i32_7 = arith.constant 6 : i32
    %20 = vector.broadcast %c6_i32_7 : i32 to vector<192x128xi32>
    %21 = arith.cmpi sge, %15, %20 : vector<192x128xi32>
    %c12_i32 = arith.constant 12 : i32
    %22 = vector.broadcast %c12_i32 : i32 to vector<192x128xi32>
    %23 = arith.cmpi slt, %15, %22 : vector<192x128xi32>
    %24 = arith.andi %21, %23 : vector<192x128xi1>
    %c191_i32 = arith.constant 191 : i32
    %25 = tpu.dynamic_rotate %14 by %c191_i32 dim 0 : vector<192x128xf32>, i32 -> vector<192x128xf32>
    %cst_8 = arith.constant 0.000000e+00 : f32
    %26 = vector.broadcast %cst_8 : f32 to vector<192x128xf32>
    %27 = arith.select %24, %25, %26 : vector<192x128xi1>, vector<192x128xf32>
    %28 = arith.addf %19, %27 : vector<192x128xf32>
    %c12_i32_9 = arith.constant 12 : i32
    %29 = vector.broadcast %c12_i32_9 : i32 to vector<192x128xi32>
    %30 = arith.cmpi sge, %15, %29 : vector<192x128xi32>
    %c18_i32 = arith.constant 18 : i32
    %31 = vector.broadcast %c18_i32 : i32 to vector<192x128xi32>
    %32 = arith.cmpi slt, %15, %31 : vector<192x128xi32>
    %33 = arith.andi %30, %32 : vector<192x128xi1>
    %c190_i32 = arith.constant 190 : i32
    %34 = tpu.dynamic_rotate %14 by %c190_i32 dim 0 : vector<192x128xf32>, i32 -> vector<192x128xf32>
    %cst_10 = arith.constant 0.000000e+00 : f32
    %35 = vector.broadcast %cst_10 : f32 to vector<192x128xf32>
    %36 = arith.select %33, %34, %35 : vector<192x128xi1>, vector<192x128xf32>
    %37 = arith.addf %28, %36 : vector<192x128xf32>
    %c18_i32_11 = arith.constant 18 : i32
    %38 = vector.broadcast %c18_i32_11 : i32 to vector<192x128xi32>
    %39 = arith.cmpi sge, %15, %38 : vector<192x128xi32>
    %c24_i32 = arith.constant 24 : i32
    %40 = vector.broadcast %c24_i32 : i32 to vector<192x128xi32>
    %41 = arith.cmpi slt, %15, %40 : vector<192x128xi32>
    %42 = arith.andi %39, %41 : vector<192x128xi1>
    %c189_i32 = arith.constant 189 : i32
    %43 = tpu.dynamic_rotate %14 by %c189_i32 dim 0 : vector<192x128xf32>, i32 -> vector<192x128xf32>
    %cst_12 = arith.constant 0.000000e+00 : f32
    %44 = vector.broadcast %cst_12 : f32 to vector<192x128xf32>
    %45 = arith.select %42, %43, %44 : vector<192x128xi1>, vector<192x128xf32>
    %46 = arith.addf %37, %45 : vector<192x128xf32>
    %c24_i32_13 = arith.constant 24 : i32
    %47 = vector.broadcast %c24_i32_13 : i32 to vector<192x128xi32>
    %48 = arith.cmpi sge, %15, %47 : vector<192x128xi32>
    %c30_i32 = arith.constant 30 : i32
    %49 = vector.broadcast %c30_i32 : i32 to vector<192x128xi32>
    %50 = arith.cmpi slt, %15, %49 : vector<192x128xi32>
    %51 = arith.andi %48, %50 : vector<192x128xi1>
    %c188_i32 = arith.constant 188 : i32
    %52 = tpu.dynamic_rotate %14 by %c188_i32 dim 0 : vector<192x128xf32>, i32 -> vector<192x128xf32>
    %cst_14 = arith.constant 0.000000e+00 : f32
    %53 = vector.broadcast %cst_14 : f32 to vector<192x128xf32>
    %54 = arith.select %51, %52, %53 : vector<192x128xi1>, vector<192x128xf32>
    %55 = arith.addf %46, %54 : vector<192x128xf32>
    %56 = arith.truncf %55 : vector<192x128xf32> to vector<192x128xbf16>
    %c0_15 = arith.constant 0 : index
    %c0_16 = arith.constant 0 : index
    %c0_17 = arith.constant 0 : index
    %57 = vector.load %arg4[%c0_15, %c0_16, %c0_17] : memref<5x128x128xbf16, #tpu.memory_space<vmem>>, vector<1x128x128xbf16>
    %58 = vector.shape_cast %57 : vector<1x128x128xbf16> to vector<128x128xbf16>
    %cst_18 = arith.constant dense<0.000000e+00> : vector<192x128xf32>
    %59 = tpu.matmul %56, %58, %cst_18 {dimension_numbers = #tpu.dot_dimension_numbers<[1], [0], [0], [1], [0, 0, 1, 1], [], []>} : vector<192x128xbf16>, vector<128x128xbf16>, vector<192x128xf32> -> vector<192x128xf32>
    %c176_i32 = arith.constant 176 : i32
    %60 = tpu.dynamic_rotate %55 by %c176_i32 dim 0 : vector<192x128xf32>, i32 -> vector<192x128xf32>
    %61 = arith.truncf %60 : vector<192x128xf32> to vector<192x128xbf16>
    %c1 = arith.constant 1 : index
    %c0_19 = arith.constant 0 : index
    %c0_20 = arith.constant 0 : index
    %62 = vector.load %arg4[%c1, %c0_19, %c0_20] : memref<5x128x128xbf16, #tpu.memory_space<vmem>>, vector<1x128x128xbf16>
    %63 = vector.shape_cast %62 : vector<1x128x128xbf16> to vector<128x128xbf16>
    %cst_21 = arith.constant dense<0.000000e+00> : vector<192x128xf32>
    %64 = tpu.matmul %61, %63, %cst_21 {dimension_numbers = #tpu.dot_dimension_numbers<[1], [0], [0], [1], [0, 0, 1, 1], [], []>} : vector<192x128xbf16>, vector<128x128xbf16>, vector<192x128xf32> -> vector<192x128xf32>
    %65 = arith.addf %59, %64 : vector<192x128xf32>
    %c160_i32 = arith.constant 160 : i32
    %66 = tpu.dynamic_rotate %55 by %c160_i32 dim 0 : vector<192x128xf32>, i32 -> vector<192x128xf32>
    %67 = arith.truncf %66 : vector<192x128xf32> to vector<192x128xbf16>
    %c2 = arith.constant 2 : index
    %c0_22 = arith.constant 0 : index
    %c0_23 = arith.constant 0 : index
    %68 = vector.load %arg4[%c2, %c0_22, %c0_23] : memref<5x128x128xbf16, #tpu.memory_space<vmem>>, vector<1x128x128xbf16>
    %69 = vector.shape_cast %68 : vector<1x128x128xbf16> to vector<128x128xbf16>
    %cst_24 = arith.constant dense<0.000000e+00> : vector<192x128xf32>
    %70 = tpu.matmul %67, %69, %cst_24 {dimension_numbers = #tpu.dot_dimension_numbers<[1], [0], [0], [1], [0, 0, 1, 1], [], []>} : vector<192x128xbf16>, vector<128x128xbf16>, vector<192x128xf32> -> vector<192x128xf32>
    %71 = arith.addf %65, %70 : vector<192x128xf32>
    %c144_i32 = arith.constant 144 : i32
    %72 = tpu.dynamic_rotate %55 by %c144_i32 dim 0 : vector<192x128xf32>, i32 -> vector<192x128xf32>
    %73 = arith.truncf %72 : vector<192x128xf32> to vector<192x128xbf16>
    %c3 = arith.constant 3 : index
    %c0_25 = arith.constant 0 : index
    %c0_26 = arith.constant 0 : index
    %74 = vector.load %arg4[%c3, %c0_25, %c0_26] : memref<5x128x128xbf16, #tpu.memory_space<vmem>>, vector<1x128x128xbf16>
    %75 = vector.shape_cast %74 : vector<1x128x128xbf16> to vector<128x128xbf16>
    %cst_27 = arith.constant dense<0.000000e+00> : vector<192x128xf32>
    %76 = tpu.matmul %73, %75, %cst_27 {dimension_numbers = #tpu.dot_dimension_numbers<[1], [0], [0], [1], [0, 0, 1, 1], [], []>} : vector<192x128xbf16>, vector<128x128xbf16>, vector<192x128xf32> -> vector<192x128xf32>
    %77 = arith.addf %71, %76 : vector<192x128xf32>
    %c128_i32 = arith.constant 128 : i32
    %78 = tpu.dynamic_rotate %55 by %c128_i32 dim 0 : vector<192x128xf32>, i32 -> vector<192x128xf32>
    %79 = arith.truncf %78 : vector<192x128xf32> to vector<192x128xbf16>
    %c4 = arith.constant 4 : index
    %c0_28 = arith.constant 0 : index
    %c0_29 = arith.constant 0 : index
    %80 = vector.load %arg4[%c4, %c0_28, %c0_29] : memref<5x128x128xbf16, #tpu.memory_space<vmem>>, vector<1x128x128xbf16>
    %81 = vector.shape_cast %80 : vector<1x128x128xbf16> to vector<128x128xbf16>
    %cst_30 = arith.constant dense<0.000000e+00> : vector<192x128xf32>
    %82 = tpu.matmul %79, %81, %cst_30 {dimension_numbers = #tpu.dot_dimension_numbers<[1], [0], [0], [1], [0, 0, 1, 1], [], []>} : vector<192x128xbf16>, vector<128x128xbf16>, vector<192x128xf32> -> vector<192x128xf32>
    %83 = arith.addf %77, %82 : vector<192x128xf32>
    %c0_31 = arith.constant 0 : index
    %c0_32 = arith.constant 0 : index
    %84 = vector.load %arg5[%c0_31, %c0_32] : memref<1x128xf32, #tpu.memory_space<vmem>>, vector<1x128xf32>
    %85 = vector.broadcast %84 : vector<1x128xf32> to vector<192x128xf32>
    %86 = arith.addf %83, %85 : vector<192x128xf32>
    %cst_33 = arith.constant 0.000000e+00 : f32
    %87 = vector.broadcast %cst_33 : f32 to vector<192x128xf32>
    %88 = arith.maximumf %86, %87 : vector<192x128xf32>
    %c191_i32_34 = arith.constant 191 : i32
    %89 = tpu.dynamic_rotate %88 by %c191_i32_34 dim 0 : vector<192x128xf32>, i32 -> vector<192x128xf32>
    %90 = arith.maximumf %88, %89 : vector<192x128xf32>
    %c176_i32_35 = arith.constant 176 : i32
    %91 = tpu.dynamic_rotate %90 by %c176_i32_35 dim 0 : vector<192x128xf32>, i32 -> vector<192x128xf32>
    %92 = arith.maximumf %90, %91 : vector<192x128xf32>
    %c0_36 = arith.constant 0 : index
    %c0_37 = arith.constant 0 : index
    %93 = vector.load %arg6[%c0_36, %c0_37] : memref<16x192xbf16, #tpu.memory_space<vmem>>, vector<16x192xbf16>
    %94 = arith.truncf %92 : vector<192x128xf32> to vector<192x128xbf16>
    %cst_38 = arith.constant dense<0.000000e+00> : vector<16x128xf32>
    %95 = tpu.matmul %93, %94, %cst_38 {dimension_numbers = #tpu.dot_dimension_numbers<[1], [0], [0], [1], [0, 0, 1, 1], [], []>} : vector<16x192xbf16>, vector<192x128xbf16>, vector<16x128xf32> -> vector<16x128xf32>
    %96 = tpu.iota {dimensions = array<i32: 1>} : vector<8x128xi32>
    %97 = tpu.iota {dimensions = array<i32: 0>} : vector<8x128xi32>
    %c16_i32 = arith.constant 16 : i32
    %98 = vector.broadcast %c16_i32 : i32 to vector<8x128xi32>
    %99 = arith.muli %97, %98 : vector<8x128xi32>
    %100 = arith.cmpi sge, %96, %99 : vector<8x128xi32>
    %c16_i32_39 = arith.constant 16 : i32
    %101 = vector.broadcast %c16_i32_39 : i32 to vector<8x128xi32>
    %102 = arith.addi %99, %101 : vector<8x128xi32>
    %103 = arith.cmpi slt, %96, %102 : vector<8x128xi32>
    %104 = arith.andi %100, %103 : vector<8x128xi1>
    %105 = vector.extract_strided_slice %95 {offsets = [0, 0], sizes = [8, 128], strides = [1, 1]} : vector<16x128xf32> to vector<8x128xf32>
    %cst_40 = arith.constant 0.000000e+00 : f32
    %106 = vector.broadcast %cst_40 : f32 to vector<8x128xf32>
    %107 = arith.select %104, %105, %106 : vector<8x128xi1>, vector<8x128xf32>
    %cst_41 = arith.constant dense<0.000000e+00> : vector<128xf32>
    %108 = vector.multi_reduction <add>, %107, %cst_41 [0] : vector<8x128xf32> to vector<128xf32>
    %109 = vector.shape_cast %108 : vector<128xf32> to vector<1x128xf32>
    %110 = vector.extract_strided_slice %95 {offsets = [8, 0], sizes = [8, 128], strides = [1, 1]} : vector<16x128xf32> to vector<8x128xf32>
    %cst_42 = arith.constant 0.000000e+00 : f32
    %111 = vector.broadcast %cst_42 : f32 to vector<8x128xf32>
    %112 = arith.select %104, %110, %111 : vector<8x128xi1>, vector<8x128xf32>
    %cst_43 = arith.constant dense<0.000000e+00> : vector<128xf32>
    %113 = vector.multi_reduction <add>, %112, %cst_43 [0] : vector<8x128xf32> to vector<128xf32>
    %114 = vector.shape_cast %113 : vector<128xf32> to vector<1x128xf32>
    %115 = arith.truncf %109 : vector<1x128xf32> to vector<1x128xbf16>
    %c0_44 = arith.constant 0 : index
    %c0_45 = arith.constant 0 : index
    %c0_46 = arith.constant 0 : index
    %116 = vector.load %arg7[%c0_44, %c0_45, %c0_46] : memref<2x128x128xbf16, #tpu.memory_space<vmem>>, vector<1x128x128xbf16>
    %117 = vector.shape_cast %116 : vector<1x128x128xbf16> to vector<128x128xbf16>
    %cst_47 = arith.constant dense<0.000000e+00> : vector<1x128xf32>
    %118 = tpu.matmul %115, %117, %cst_47 {dimension_numbers = #tpu.dot_dimension_numbers<[1], [0], [0], [1], [0, 0, 1, 1], [], []>} : vector<1x128xbf16>, vector<128x128xbf16>, vector<1x128xf32> -> vector<1x128xf32>
    %119 = arith.truncf %114 : vector<1x128xf32> to vector<1x128xbf16>
    %c1_48 = arith.constant 1 : index
    %c0_49 = arith.constant 0 : index
    %c0_50 = arith.constant 0 : index
    %120 = vector.load %arg7[%c1_48, %c0_49, %c0_50] : memref<2x128x128xbf16, #tpu.memory_space<vmem>>, vector<1x128x128xbf16>
    %121 = vector.shape_cast %120 : vector<1x128x128xbf16> to vector<128x128xbf16>
    %cst_51 = arith.constant dense<0.000000e+00> : vector<1x128xf32>
    %122 = tpu.matmul %119, %121, %cst_51 {dimension_numbers = #tpu.dot_dimension_numbers<[1], [0], [0], [1], [0, 0, 1, 1], [], []>} : vector<1x128xbf16>, vector<128x128xbf16>, vector<1x128xf32> -> vector<1x128xf32>
    %123 = arith.addf %118, %122 : vector<1x128xf32>
    %c0_52 = arith.constant 0 : index
    %c0_53 = arith.constant 0 : index
    %124 = vector.load %arg8[%c0_52, %c0_53] : memref<1x128xf32, #tpu.memory_space<vmem>>, vector<1x128xf32>
    %125 = arith.addf %123, %124 : vector<1x128xf32>
    %cst_54 = arith.constant 0.000000e+00 : f32
    %126 = vector.broadcast %cst_54 : f32 to vector<1x128xf32>
    %127 = arith.maximumf %125, %126 : vector<1x128xf32>
    %128 = arith.truncf %127 : vector<1x128xf32> to vector<1x128xbf16>
    %c0_55 = arith.constant 0 : index
    %c0_56 = arith.constant 0 : index
    %129 = vector.load %arg9[%c0_55, %c0_56] : memref<128x128xbf16, #tpu.memory_space<vmem>>, vector<128x128xbf16>
    %cst_57 = arith.constant dense<0.000000e+00> : vector<1x128xf32>
    %130 = tpu.matmul %128, %129, %cst_57 {dimension_numbers = #tpu.dot_dimension_numbers<[1], [0], [0], [1], [0, 0, 1, 1], [], []>} : vector<1x128xbf16>, vector<128x128xbf16>, vector<1x128xf32> -> vector<1x128xf32>
    %c0_58 = arith.constant 0 : index
    %c0_59 = arith.constant 0 : index
    %131 = vector.load %arg10[%c0_58, %c0_59] : memref<1x128xf32, #tpu.memory_space<vmem>>, vector<1x128xf32>
    %132 = arith.addf %130, %131 : vector<1x128xf32>
    %cst_60 = arith.constant 0.000000e+00 : f32
    %133 = vector.broadcast %cst_60 : f32 to vector<1x128xf32>
    %134 = arith.maximumf %132, %133 : vector<1x128xf32>
    %135 = arith.truncf %134 : vector<1x128xf32> to vector<1x128xbf16>
    %c0_61 = arith.constant 0 : index
    %c0_62 = arith.constant 0 : index
    %136 = vector.load %arg11[%c0_61, %c0_62] : memref<128x128xbf16, #tpu.memory_space<vmem>>, vector<128x128xbf16>
    %cst_63 = arith.constant dense<0.000000e+00> : vector<1x128xf32>
    %137 = tpu.matmul %135, %136, %cst_63 {dimension_numbers = #tpu.dot_dimension_numbers<[1], [0], [0], [1], [0, 0, 1, 1], [], []>} : vector<1x128xbf16>, vector<128x128xbf16>, vector<1x128xf32> -> vector<1x128xf32>
    %c0_64 = arith.constant 0 : index
    %c0_65 = arith.constant 0 : index
    %138 = vector.load %arg12[%c0_64, %c0_65] : memref<1x128xf32, #tpu.memory_space<vmem>>, vector<1x128xf32>
    %139 = arith.addf %137, %138 : vector<1x128xf32>
    %140 = vector.shape_cast %139 : vector<1x128xf32> to vector<1x128xf32>
    %141 = vector.broadcast %140 : vector<1x128xf32> to vector<8x128xf32>
    %142 = vector.shape_cast %141 : vector<8x128xf32> to vector<1x8x128xf32>
    %c0_66 = arith.constant 0 : index
    %c0_67 = arith.constant 0 : index
    %c0_68 = arith.constant 0 : index
    %143 = vector.load %arg13[%c0_66, %c0_67, %c0_68] : memref<1x8x128xf32, #tpu.memory_space<vmem>>, vector<1x8x128xf32>
    tpu.vector_store %arg13[%c0_66, %c0_67, %c0_68], %142 {strides = array<i32>} : memref<1x8x128xf32, #tpu.memory_space<vmem>>, vector<1x8x128xf32>,
    return
  }
  func.func @transform_0(%arg0: i32) -> (i32, i32) {
    %c0_i32 = arith.constant 0 : i32
    %c0_i32_0 = arith.constant 0 : i32
    return %arg0, %c0_i32 : i32, i32
  }
  func.func @transform_1(%arg0: i32) -> (i32, i32) {
    %c0_i32 = arith.constant 0 : i32
    %c0_i32_0 = arith.constant 0 : i32
    %c0_i32_1 = arith.constant 0 : i32
    return %c0_i32, %c0_i32_0 : i32, i32
  }
  func.func @transform_2(%arg0: i32) -> (i32, i32) {
    %c0_i32 = arith.constant 0 : i32
    %c0_i32_0 = arith.constant 0 : i32
    %c0_i32_1 = arith.constant 0 : i32
    return %c0_i32, %c0_i32_0 : i32, i32
  }
  func.func @transform_3(%arg0: i32) -> (i32, i32, i32) {
    %c0_i32 = arith.constant 0 : i32
    %c0_i32_0 = arith.constant 0 : i32
    %c0_i32_1 = arith.constant 0 : i32
    %c0_i32_2 = arith.constant 0 : i32
    return %c0_i32, %c0_i32_0, %c0_i32_1 : i32, i32, i32
  }
  func.func @transform_4(%arg0: i32) -> (i32, i32) {
    %c0_i32 = arith.constant 0 : i32
    %c0_i32_0 = arith.constant 0 : i32
    %c0_i32_1 = arith.constant 0 : i32
    return %c0_i32, %c0_i32_0 : i32, i32
  }
  func.func @transform_5(%arg0: i32) -> (i32, i32) {
    %c0_i32 = arith.constant 0 : i32
    %c0_i32_0 = arith.constant 0 : i32
    %c0_i32_1 = arith.constant 0 : i32
    return %c0_i32, %c0_i32_0 : i32, i32
  }
  func.func @transform_6(%arg0: i32) -> (i32, i32, i32) {
    %c0_i32 = arith.constant 0 : i32
    %c0_i32_0 = arith.constant 0 : i32
    %c0_i32_1 = arith.constant 0 : i32
    %c0_i32_2 = arith.constant 0 : i32
    return %c0_i32, %c0_i32_0, %c0_i32_1 : i32, i32, i32
  }
  func.func @transform_7(%arg0: i32) -> (i32, i32) {
    %c0_i32 = arith.constant 0 : i32
    %c0_i32_0 = arith.constant 0 : i32
    %c0_i32_1 = arith.constant 0 : i32
    return %c0_i32, %c0_i32_0 : i32, i32
  }
  func.func @transform_8(%arg0: i32) -> (i32, i32) {
    %c0_i32 = arith.constant 0 : i32
    %c0_i32_0 = arith.constant 0 : i32
    %c0_i32_1 = arith.constant 0 : i32
    return %c0_i32, %c0_i32_0 : i32, i32
  }
  func.func @transform_9(%arg0: i32) -> (i32, i32) {
    %c0_i32 = arith.constant 0 : i32
    %c0_i32_0 = arith.constant 0 : i32
    %c0_i32_1 = arith.constant 0 : i32
    return %c0_i32, %c0_i32_0 : i32, i32
  }
  func.func @transform_10(%arg0: i32) -> (i32, i32) {
    %c0_i32 = arith.constant 0 : i32
    %c0_i32_0 = arith.constant 0 : i32
    %c0_i32_1 = arith.constant 0 : i32
    return %c0_i32, %c0_i32_0 : i32, i32
  }
  func.func @transform_11(%arg0: i32) -> (i32, i32) {
    %c0_i32 = arith.constant 0 : i32
    %c0_i32_0 = arith.constant 0 : i32
    %c0_i32_1 = arith.constant 0 : i32
    return %c0_i32, %c0_i32_0 : i32, i32
  }
  func.func @transform_12(%arg0: i32) -> (i32, i32, i32) {
    %c0_i32 = arith.constant 0 : i32
    %c0_i32_0 = arith.constant 0 : i32
    %c0_i32_1 = arith.constant 0 : i32
    return %arg0, %c0_i32, %c0_i32_0 : i32, i32, i32
  }
}

</mosaic_0001>

<bundles_post_ra>
// kernel: lenet_forward.1
= control target key start
LH: loop header
LB: loop body
LE: loop exit
PB: predicated region body
PF: predicated region fallthrough
CT: control target
= control target key end

     0   :  { %s4848_s21 = smov 0   ;;  %s6917_s0 = inlined_call_operand.vmem [shape: bf16[1536,32], index: 0, kind: input, shape index: {}]   ;;  %s6918_s1 = inlined_call_operand.vmem [shape: bf16[32,128], index: 1, kind: input, shape index: {}]   ;;  %s6919_s2 = inlined_call_operand.vmem [shape: f32[1,128], index: 2, kind: input, shape index: {}]   ;;  %s6920_s3 = inlined_call_operand.vmem [shape: bf16[5,128,128], index: 3, kind: input, shape index: {}]   ;;  %s6921_s4 = inlined_call_operand.vmem [shape: f32[1,128], index: 4, kind: input, shape index: {}]   ;;  %s6922_s5 = inlined_call_operand.vmem [shape: bf16[16,192], index: 5, kind: input, shape index: {}]   ;;  %s6923_s6 = inlined_call_operand.vmem [shape: bf16[2,128,128], index: 6, kind: input, shape index: {}]   ;;  %s6924_s7 = inlined_call_operand.vmem [shape: f32[1,128], index: 7, kind: input, shape index: {}]   ;;  %s6925_s8 = inlined_call_operand.vmem [shape: bf16[128,128], index: 8, kind: input, shape index: {}]   ;;  %s6926_s9 = inlined_call_operand.vmem [shape: f32[1,128], index: 9, kind: input, shape index: {}]   ;;  %s6927_s10 = inlined_call_operand.vmem [shape: bf16[128,128], index: 10, kind: input, shape index: {}]   ;;  %s6928_s11 = inlined_call_operand.vmem [shape: f32[1,128], index: 11, kind: input, shape index: {}]   ;;  %s6929_s12 = inlined_call_operand.vmem [shape: f32[2,8,128], index: 12, kind: output, shape index: {}]  }
   0x1 LB: > { %s4854_s22 = sadd.s32 4294967295, %s4778_s21   ;;  %p3713_p0 = scmp.ge.s32.totalorder %s4778_s21, 1  ;;  %s4778_s21 = sphi %s4848_s21, %s22_s21  }
   0x2   : > { %p363_p1 = scmp.lt.s32.totalorder %s4778_s21, 3 }
   0x4   : > { %p364_p2 = pnand %p3713_p0, %p363_p1 }
   0x6   : > { %367 = sbr.rel (%p364_p2) target bundleno = 1896 (0x768), region = 68 }
   0xd   : > { %v4646_v0 = vld [vmem:[%s6918_s1] sm:$0xff]   ;;  %s404_s25 = smul.u32 96, %s4854_s22  ;;  %v4647_v1 = vld [vmem:[%s6918_s1 + $0x8] sm:$0xff]   ;;  %vm774_vm0 = vcmask 261120   ;;  %p410_p4 = scmp.lt.s32.totalorder %s4854_s22, 1 }
   0xe   : > { %4159 = vmatprep.subr.bf16.mxu0 %v4646_v0  ;;  %v4696_v62 = vld [vmem:[%s6920_s3 + $0x40] sm:$0xff]   ;;  %v4697_v63 = vld [vmem:[%s6920_s3 + $0x48] sm:$0xff]  }
   0xf   : > { %p405_p3 = scmp.lt.s32.totalorder %s404_s25, 191  ;;  %4160 = vmatpush3.bf16.msra.mxu0 %v4646_v0  ;;  %4259 = vmatprep.subr.bf16.mxu1 %v4696_v62  ;;  %s7162_s22 = smov (!%p410_p4, %s4854_s22), 1 }
  0x10   : > { %4161 = vmatprep.subr.bf16.mxu0 %v4647_v1  ;;  %4260 = vmatpush3.bf16.msra.mxu1 %v4696_v62  ;;  %s3715_s14 = sshll.u32 %s7162_s22, 3 }
  0x11   : > { %s7160_s25 = smov (!%p405_p3, %s404_s25), 191  ;;  %4261 = vmatprep.subr.bf16.mxu1 %v4697_v63  ;;  %s413_s17 = scalar_lea.vmem %s6929_s12, %s3715_s14 }
  0x12   : > { %s3714_s28 = sshll.u32 %s7160_s25, 2 }
  0x13   : > { %4162 = vmatpush3.bf16.msra.mxu0 %v4647_v1  ;;  %s4868_s13 = scalar_lea.vmem %s6917_s0, %s3714_s28 }
  0x14   : > { %v4648_v2 = vld [vmem:[%s4868_s13] sm:$0xff]   ;;  %v4649_v3 = vld [vmem:[%s4868_s13 + $0x8] sm:$0xff]   ;;  %v4650_v4 = vld [vmem:[%s4868_s13 + $0x10] sm:$0xff]   ;;  %4262 = vmatpush3.bf16.msra.mxu1 %v4697_v63 }
  0x15   : > { %4163 = vmatprep.mubr.msk.bf16.mxu0 %vm774_vm0, %v4648_v2  ;;  %v4651_v5 = vld [vmem:[%s4868_s13 + $0x18] sm:$0xff]   ;;  %v4652_v6 = vld [vmem:[%s4868_s13 + $0x20] sm:$0xff]   ;;  %v4653_v7 = vld [vmem:[%s4868_s13 + $0x28] sm:$0xff]  }
  0x16   : > { %4164 = vmatmul.mubr.msk.bf16.vlgmr.msra.gmra.mrb[0].mxu0 %vm774_vm0, %v4649_v3  ;;  %v4654_v8 = vld [vmem:[%s4868_s13 + $0x30] sm:$0xff]   ;;  %v4655_v9 = vld [vmem:[%s4868_s13 + $0x38] sm:$0xff]   ;;  %v4656_v10 = vld [vmem:[%s4868_s13 + $0x40] sm:$0xff]  }
  0x17   : > { %4167 = vmatprep.mubr.msk.bf16.mxu0 %vm774_vm0, %v4650_v4  ;;  %v4657_v11 = vld [vmem:[%s4868_s13 + $0x48] sm:$0xff]   ;;  %v4658_v12 = vld [vmem:[%s4868_s13 + $0x50] sm:$0xff]   ;;  %v4659_v13 = vld [vmem:[%s4868_s13 + $0x58] sm:$0xff]  }
  0x18   : > { %v4660_v14 = vld [vmem:[%s4868_s13 + $0x60] sm:$0xff]   ;;  %v4661_v15 = vld [vmem:[%s4868_s13 + $0x68] sm:$0xff]   ;;  %v4662_v16 = vld [vmem:[%s4868_s13 + $0x70] sm:$0xff]  }
  0x19   : > { %v4663_v17 = vld [vmem:[%s4868_s13 + $0x78] sm:$0xff]   ;;  %v4664_v18 = vld [vmem:[%s4868_s13 + $0x80] sm:$0xff]   ;;  %v4665_v19 = vld [vmem:[%s4868_s13 + $0x88] sm:$0xff]  }
  0x1a   : > { %v4666_v20 = vld [vmem:[%s4868_s13 + $0x90] sm:$0xff]   ;;  %v4667_v21 = vld [vmem:[%s4868_s13 + $0x98] sm:$0xff]   ;;  %v4668_v22 = vld [vmem:[%s4868_s13 + $0xa0] sm:$0xff]  }
  0x1b   : > { %v4669_v23 = vld [vmem:[%s4868_s13 + $0xa8] sm:$0xff]   ;;  %v4670_v24 = vld [vmem:[%s4868_s13 + $0xb0] sm:$0xff]   ;;  %v4671_v25 = vld [vmem:[%s4868_s13 + $0xb8] sm:$0xff]  }
  0x1c   : > { %v4672_v26 = vld [vmem:[%s4868_s13 + $0xc0] sm:$0xff]   ;;  %v4673_v27 = vld [vmem:[%s4868_s13 + $0xc8] sm:$0xff]   ;;  %v4674_v28 = vld [vmem:[%s4868_s13 + $0xd0] sm:$0xff]  }
  0x1d   : > { %v4675_v29 = vld [vmem:[%s4868_s13 + $0xd8] sm:$0xff]   ;;  %v4676_v30 = vld [vmem:[%s4868_s13 + $0xe0] sm:$0xff]   ;;  %v4677_v31 = vld [vmem:[%s4868_s13 + $0xe8] sm:$0xff]  }
  0x1e   : > { %4168 = vmatmul.mubr.msk.bf16.gmra.mrb[4].mxu0 %vm774_vm0, %v4651_v5  ;;  %v4678_v32 = vld [vmem:[%s4868_s13 + $0xf0] sm:$0xff]   ;;  %v4679_v33 = vld [vmem:[%s4868_s13 + $0xf8] sm:$0xff]   ;;  %v4680_v34 = vld [vmem:[%s4868_s13 + $0x100] sm:$0xff]  }
  0x1f   : > { %4171 = vmatprep.mubr.msk.bf16.mxu0 %vm774_vm0, %v4652_v6  ;;  %v4681_v35 = vld [vmem:[%s4868_s13 + $0x108] sm:$0xff]   ;;  %v4682_v36 = vld [vmem:[%s4868_s13 + $0x110] sm:$0xff]   ;;  %v4683_v37 = vld [vmem:[%s4868_s13 + $0x118] sm:$0xff]  }
  0x20   : > { %v4684_v38 = vld [vmem:[%s4868_s13 + $0x120] sm:$0xff]   ;;  %v4685_v39 = vld [vmem:[%s4868_s13 + $0x128] sm:$0xff]   ;;  %v4686_v40 = vld [vmem:[%s4868_s13 + $0x130] sm:$0xff]  }
  0x21   : > { %v4687_v41 = vld [vmem:[%s4868_s13 + $0x138] sm:$0xff]   ;;  %v4688_v42 = vld [vmem:[%s4868_s13 + $0x140] sm:$0xff]   ;;  %v4689_v43 = vld [vmem:[%s4868_s13 + $0x148] sm:$0xff]  }
  0x22   : > { %v4690_v44 = vld [vmem:[%s4868_s13 + $0x150] sm:$0xff]   ;;  %v4691_v45 = vld [vmem:[%s4868_s13 + $0x158] sm:$0xff]   ;;  %v4692_v46 = vld [vmem:[%s4868_s13 + $0x160] sm:$0xff]  }
  0x23   : > { %v4693_v47 = vld [vmem:[%s4868_s13 + $0x168] sm:$0xff]   ;;  %v4694_v48 = vld [vmem:[%s4868_s13 + $0x170] sm:$0xff]   ;;  %v4695_v49 = vld [vmem:[%s4868_s13 + $0x178] sm:$0xff]  }
  0x24   : > { %v4698_v4 = vld [vmem:[%s6920_s3 + $0x50] sm:$0xff]  }
  0x25   : > { %4263 = vmatprep.subr.bf16.mxu1 %v4698_v4 }
  0x26   : > { %4172 = vmatmul.mubr.msk.bf16.gmra.mrb[8].mxu0 %vm774_vm0, %v4653_v7  ;;  %4264 = vmatpush3.bf16.msra.mxu1 %v4698_v4  ;;  %v4699_v7 = vld [vmem:[%s6920_s3 + $0x58] sm:$0xff]  }
  0x27   : > { %4175 = vmatprep.mubr.msk.bf16.mxu0 %vm774_vm0, %v4654_v8  ;;  %4265 = vmatprep.subr.bf16.mxu1 %v4699_v7 }
  0x2a   : > { %4266 = vmatpush3.bf16.msra.mxu1 %v4699_v7 }
  0x2e   : > { %4176 = vmatmul.mubr.msk.bf16.gmra.mrb[12].mxu0 %vm774_vm0, %v4655_v9 }
  0x2f   : > { %4179 = vmatprep.mubr.msk.bf16.mxu0 %vm774_vm0, %v4656_v10 }
  0x36   : > { %4180 = vmatmul.mubr.msk.bf16.gmra.mrb[16].mxu0 %vm774_vm0, %v4657_v11  ;;  %v4700_v11 = vld [vmem:[%s6920_s3 + $0x60] sm:$0xff]  }
  0x37   : > { %4183 = vmatprep.mubr.msk.bf16.mxu0 %vm774_vm0, %v4658_v12  ;;  %4267 = vmatprep.subr.bf16.mxu1 %v4700_v11 }
  0x38   : > { %4268 = vmatpush3.bf16.msra.mxu1 %v4700_v11 }
  0x3e   : > { %4184 = vmatmul.mubr.msk.bf16.gmra.mrb[20].mxu0 %vm774_vm0, %v4659_v13 }
  0x3f   : > { %4187 = vmatprep.mubr.msk.bf16.mxu0 %vm774_vm0, %v4660_v14 }
  0x46   : > { %4188 = vmatmul.mubr.msk.bf16.gmra.mrb[24].mxu0 %vm774_vm0, %v4661_v15  ;;  %v5024_v15 = vld [vmem:[%s6919_s2] ss:$0 sm:$0xff] }
  0x47   : > { %4191 = vmatprep.mubr.msk.bf16.mxu0 %vm774_vm0, %v4662_v16  ;;  %v4701_v16 = vld [vmem:[%s6920_s3 + $0x68] sm:$0xff]  }
  0x48   : > { %4269 = vmatprep.subr.bf16.mxu1 %v4701_v16 }
  0x49   : > { %4270 = vmatpush3.bf16.msra.mxu1 %v4701_v16 }
  0x4e   : > { %4192 = vmatmul.mubr.msk.bf16.gmra.mrb[28].mxu0 %vm774_vm0, %v4663_v17 }
  0x4f   : > { %4195 = vmatprep.mubr.msk.bf16.mxu0 %vm774_vm0, %v4664_v18 }
  0x56   : > { %4196 = vmatmul.mubr.msk.bf16.gmra.mrb[32].mxu0 %vm774_vm0, %v4665_v19 }
  0x57   : > { %4199 = vmatprep.mubr.msk.bf16.mxu0 %vm774_vm0, %v4666_v20 }
  0x5e   : > { %4200 = vmatmul.mubr.msk.bf16.gmra.mrb[36].mxu0 %vm774_vm0, %v4667_v21 }
  0x5f   : > { %4203 = vmatprep.mubr.msk.bf16.mxu0 %vm774_vm0, %v4668_v22 }
  0x66   : > { %4204 = vmatmul.mubr.msk.bf16.gmra.mrb[40].mxu0 %vm774_vm0, %v4669_v23  ;;  %v4702_v23 = vld [vmem:[%s6920_s3 + $0x70] sm:$0xff]  }
  0x67   : > { %4207 = vmatprep.mubr.msk.bf16.mxu0 %vm774_vm0, %v4670_v24  ;;  %4271 = vmatprep.subr.bf16.mxu1 %v4702_v23 }
  0x68   : > { %4272 = vmatpush3.bf16.msra.mxu1 %v4702_v23 }
  0x6e   : > { %4208 = vmatmul.mubr.msk.bf16.gmra.mrb[44].mxu0 %vm774_vm0, %v4671_v25 }
  0x6f   : > { %4211 = vmatprep.mubr.msk.bf16.mxu0 %vm774_vm0, %v4672_v26 }
  0x76   : > { %4212 = vmatmul.mubr.msk.bf16.gmra.mrb[48].mxu0 %vm774_vm0, %v4673_v27 }
  0x77   : > { %4215 = vmatprep.mubr.msk.bf16.mxu0 %vm774_vm0, %v4674_v28 }
  0x7e   : > { %4216 = vmatmul.mubr.msk.bf16.gmra.mrb[52].mxu0 %vm774_vm0, %v4675_v29 }
  0x7f   : > { %4219 = vmatprep.mubr.msk.bf16.mxu0 %vm774_vm0, %v4676_v30 }
  0x86   : > { %4220 = vmatmul.mubr.msk.bf16.gmra.mrb[56].mxu0 %vm774_vm0, %v4677_v31 }
  0x87   : > { %4223 = vmatprep.mubr.msk.bf16.mxu0 %vm774_vm0, %v4678_v32 }
  0x8e   : > { %4224 = vmatmul.mubr.msk.bf16.gmra.mrb[60].mxu0 %vm774_vm0, %v4679_v33 }
  0x8f   : > { %4227 = vmatprep.mubr.msk.bf16.mxu0 %vm774_vm0, %v4680_v34 }
  0x96   : > { %4228 = vmatmul.mubr.msk.bf16.gmra.mrb[64].mxu0 %vm774_vm0, %v4681_v35 }
  0x97   : > { %4231 = vmatprep.mubr.msk.bf16.mxu0 %vm774_vm0, %v4682_v36 }
  0x9e   : > { %4232 = vmatmul.mubr.msk.bf16.gmra.mrb[68].mxu0 %vm774_vm0, %v4683_v37 }
  0x9f   : > { %4235 = vmatprep.mubr.msk.bf16.mxu0 %vm774_vm0, %v4684_v38 }
  0xa6   : > { %4236 = vmatmul.mubr.msk.bf16.gmra.mrb[72].mxu0 %vm774_vm0, %v4685_v39 }
  0xa7   : > { %4239 = vmatprep.mubr.msk.bf16.mxu0 %vm774_vm0, %v4686_v40 }
  0xae   : > { %4240 = vmatmul.mubr.msk.bf16.gmra.mrb[76].mxu0 %vm774_vm0, %v4687_v41 }
  0xaf   : > { %4243 = vmatprep.mubr.msk.bf16.mxu0 %vm774_vm0, %v4688_v42  ;;  %v4703_v42 = vld [vmem:[%s6920_s3 + $0x78] sm:$0xff]  }
  0xb0   : > { %4273 = vmatprep.subr.bf16.mxu1 %v4703_v42 }
  0xb1   : > { %4274 = vmatpush3.bf16.msra.mxu1 %v4703_v42 }
  0xb6   : > { %4244 = vmatmul.mubr.msk.bf16.gmra.mrb[80].mxu0 %vm774_vm0, %v4689_v43 }
  0xb7   : > { %4247 = vmatprep.mubr.msk.bf16.mxu0 %vm774_vm0, %v4690_v44 }
  0xbe   : > { %4248 = vmatmul.mubr.msk.bf16.gmra.mrb[84].mxu0 %vm774_vm0, %v4691_v45 }
  0xbf   : > { %4251 = vmatprep.mubr.msk.bf16.mxu0 %vm774_vm0, %v4692_v46 }
  0xc6   : > { %4252 = vmatmul.mubr.msk.bf16.gmra.mrb[88].mxu0 %vm774_vm0, %v4693_v47 }
  0xc7   : > { %4255 = vmatprep.mubr.msk.bf16.mxu0 %vm774_vm0, %v4694_v48 }
  0xce   : > { %4256 = vmatmul.mubr.msk.bf16.gmra.mrb[92].mxu0 %vm774_vm0, %v4695_v49 }
  0xe9   : > { %v4165_v50 = vpop.f32.mrb[0].mxu0 }
  0xea   : > { %v953_v51 = vpop.f32.mrb[1].mxu0  ;;  %v962_v17 = vadd.f32 %v4165_v50, %v5024_v15 }
  0xeb   : > { %v4166_v52 = vpop.f32.mrb[2].mxu0  ;;  %v954_v18 = vadd.f32 %v5024_v15, %v953_v51 }
  0xec   : > { %v956_v53 = vpop.f32.mrb[3].mxu0  ;;  %v965_v20 = vadd.f32 %v4166_v52, %v5024_v15  ;;  %v1338_v27 = vmax.f32 %v962_v17, 0.0 }
  0xed   : > { %v957_v24 = vadd.f32 %v5024_v15, %v956_v53  ;;  %v1336_v31 = vmax.f32 %v954_v18, 0.0 }
  0xee   : > { %v1339_v34 = vmax.f32 %v965_v20, 0.0 }
  0xef   : > { %v1337_v37 = vmax.f32 %v957_v24, 0.0 }
  0xf1   : > { %v4966_v54 = vpop.f32.mrb[4].mxu0 }
  0xf2   : > { %v4968_v55 = vpop.f32.mrb[5].mxu0  ;;  %v978_v40 = vadd.f32 %v4966_v54, %v5024_v15 }
  0xf3   : > { %v4970_v56 = vpop.f32.mrb[6].mxu0  ;;  %v970_v43 = vadd.f32 %v5024_v15, %v4968_v55 }
  0xf4   : > { %v4972_v57 = vpop.f32.mrb[7].mxu0  ;;  %v981_v46 = vadd.f32 %v4970_v56, %v5024_v15  ;;  %v1342_v52 = vmax.f32 %v978_v40, 0.0 }
  0xf5   : > { %v973_v49 = vadd.f32 %v5024_v15, %v4972_v57  ;;  %v1340_v62 = vmax.f32 %v970_v43, 0.0 }
  0xf6   : > { %v1343_v4 = vmax.f32 %v981_v46, 0.0 }
  0xf7   : > { %v1341_v16 = vmax.f32 %v973_v49, 0.0 }
  0xf9   : > { %v4974_v58 = vpop.f32.mrb[8].mxu0 }
  0xfa   : > { %v4976_v59 = vpop.f32.mrb[9].mxu0  ;;  %v994_v18 = vadd.f32 %v4974_v58, %v5024_v15 }
  0xfb   : > { %v4978_v60 = vpop.f32.mrb[10].mxu0  ;;  %v986_v20 = vadd.f32 %v5024_v15, %v4976_v59 }
  0xfc   : > { %v4980_v61 = vpop.f32.mrb[11].mxu0  ;;  %v997_v23 = vadd.f32 %v4978_v60, %v5024_v15 }
 0x101   : > { %v4988_v0 = vpop.f32.mrb[12].mxu0 }
 0x102   : > { %v4990_v1 = vpop.f32.mrb[13].mxu0  ;;  %v1010_v40 = vadd.f32 %v4988_v0, %v5024_v15 }
 0x103   : > { %v4992_v2 = vpop.f32.mrb[14].mxu0  ;;  %v1002_v43 = vadd.f32 %v5024_v15, %v4990_v1 }
 0x104   : > { %v4994_v3 = vpop.f32.mrb[15].mxu0 }
 0x109   : > { %v4999_v5 = vpop.f32.mrb[16].mxu0 }
 0x10a   : > { %v5001_v6 = vpop.f32.mrb[17].mxu0 }
 0x10b   : > { %v5006_v8 = vpop.f32.mrb[18].mxu0 }
 0x10c   : > { %v5008_v9 = vpop.f32.mrb[19].mxu0 }
 0x111   : > { %v5010_v10 = vpop.f32.mrb[20].mxu0 }
 0x112   : > { %v5015_v12 = vpop.f32.mrb[21].mxu0 }
 0x113   : > { %v5017_v13 = vpop.f32.mrb[22].mxu0 }
 0x114   : > { %v5019_v14 = vpop.f32.mrb[23].mxu0 }
 0x119   : > { %v4189_v19 = vpop.f32.mrb[24].mxu0 }
 0x11a   : > { %v1058_v21 = vadd.f32 %v4189_v19, %v5024_v15  ;;  %v1049_v22 = vpop.f32.mrb[25].mxu0 }
 0x11b   : > { %v1050_v25 = vadd.f32 %v5024_v15, %v1049_v22  ;;  %v4190_v26 = vpop.f32.mrb[26].mxu0 }
 0x11c   : > { %v1362_v28 = vmax.f32 %v1058_v21, 0.0  ;;  %v1061_v29 = vadd.f32 %v4190_v26, %v5024_v15  ;;  %v1052_v30 = vpop.f32.mrb[27].mxu0  ;;  %v989_v26 = vadd.f32 %v5024_v15, %v4980_v61 }
 0x11d   : > { %v1360_v32 = vmax.f32 %v1050_v25, 0.0  ;;  %v1053_v33 = vadd.f32 %v5024_v15, %v1052_v30 }
 0x11e   : > { %v5040_v35 = vmax.f32 %v1338_v27, %v1362_v28  ;;  %v1363_v36 = vmax.f32 %v1061_v29, 0.0  ;;  %v1346_v28 = vmax.f32 %v994_v18, 0.0 }
 0x11f   : > { %v5042_v38 = vmax.f32 %v1336_v31, %v1360_v32  ;;  %v1361_v39 = vmax.f32 %v1053_v33, 0.0  ;;  %v1344_v31 = vmax.f32 %v986_v20, 0.0  ;;  %v1018_v20 = vadd.f32 %v5024_v15, %v5001_v6 }
 0x120   : > { %v5046_v41 = vmax.f32 %v1339_v34, %v1363_v36  ;;  %v1347_v34 = vmax.f32 %v997_v23, 0.0 }
 0x121   : > { %v5053_v44 = vmax.f32 %v1337_v37, %v1361_v39  ;;  %v4193_v45 = vpop.f32.mrb[28].mxu0  ;;  %v1345_v37 = vmax.f32 %v989_v26, 0.0 }
 0x122   : > { %v1074_v47 = vadd.f32 %v4193_v45, %v5024_v15  ;;  %v1065_v48 = vpop.f32.mrb[29].mxu0 }
 0x123   : > { %v1066_v50 = vadd.f32 %v5024_v15, %v1065_v48  ;;  %v4194_v51 = vpop.f32.mrb[30].mxu0 }
 0x124   : > { %v1366_v53 = vmax.f32 %v1074_v47, 0.0  ;;  %v1077_v54 = vadd.f32 %v4194_v51, %v5024_v15  ;;  %v1068_v55 = vpop.f32.mrb[31].mxu0  ;;  %v1013_v47 = vadd.f32 %v4992_v2, %v5024_v15 }
 0x125   : > { %v1364_v63 = vmax.f32 %v1066_v50, 0.0  ;;  %v1069_v56 = vadd.f32 %v5024_v15, %v1068_v55  ;;  %v1005_v50 = vadd.f32 %v5024_v15, %v4994_v3  ;;  %v1348_v55 = vmax.f32 %v1002_v43, 0.0 }
 0x126   : > { %v5063_v7 = vmax.f32 %v1342_v52, %v1366_v53  ;;  %v1367_v11 = vmax.f32 %v1077_v54, 0.0  ;;  %v1350_v52 = vmax.f32 %v1010_v40, 0.0  ;;  %v1034_v43 = vadd.f32 %v5024_v15, %v5015_v12 }
 0x127   : > { %v5065_v17 = vmax.f32 %v1340_v62, %v1364_v63  ;;  %v1365_v57 = vmax.f32 %v1069_v56, 0.0  ;;  %v1351_v56 = vmax.f32 %v1013_v47, 0.0 }
 0x128   : > { %v5069_v19 = vmax.f32 %v1343_v4, %v1367_v11  ;;  %v1349_v11 = vmax.f32 %v1005_v50, 0.0 }
 0x129   : > { %v5073_v21 = vmax.f32 %v1341_v16, %v1365_v57  ;;  %v4197_v22 = vpop.f32.mrb[32].mxu0  ;;  %v1026_v57 = vadd.f32 %v4999_v5, %v5024_v15 }
 0x12a   : > { %v1090_v24 = vadd.f32 %v4197_v22, %v5024_v15  ;;  %v1081_v25 = vpop.f32.mrb[33].mxu0 }
 0x12b   : > { %v1082_v27 = vadd.f32 %v5024_v15, %v1081_v25  ;;  %v4198_v58 = vpop.f32.mrb[34].mxu0 }
 0x12c   : > { %v1370_v29 = vmax.f32 %v1090_v24, 0.0  ;;  %v1093_v30 = vadd.f32 %v4198_v58, %v5024_v15  ;;  %v1084_v59 = vpop.f32.mrb[35].mxu0  ;;  %v1029_v24 = vadd.f32 %v5006_v8, %v5024_v15 }
 0x12d   : > { %v1368_v32 = vmax.f32 %v1082_v27, 0.0  ;;  %v1085_v33 = vadd.f32 %v5024_v15, %v1084_v59  ;;  %v1021_v27 = vadd.f32 %v5024_v15, %v5008_v9  ;;  %v1352_v59 = vmax.f32 %v1018_v20, 0.0 }
 0x12e   : > { %v5083_v60 = vmax.f32 %v1346_v28, %v1370_v29  ;;  %v1371_v36 = vmax.f32 %v1093_v30, 0.0  ;;  %v1354_v28 = vmax.f32 %v1026_v57, 0.0 }
 0x12f   : > { %v5085_v39 = vmax.f32 %v1344_v31, %v1368_v32  ;;  %v1369_v61 = vmax.f32 %v1085_v33, 0.0  ;;  %v1355_v33 = vmax.f32 %v1029_v24, 0.0 }
 0x130   : > { %v5089_v42 = vmax.f32 %v1347_v34, %v1371_v36  ;;  %v1353_v36 = vmax.f32 %v1021_v27, 0.0 }
 0x131   : > { %v5093_v45 = vmax.f32 %v1345_v37, %v1369_v61  ;;  %v4201_v46 = vpop.f32.mrb[36].mxu0  ;;  %v1042_v61 = vadd.f32 %v5010_v10, %v5024_v15 }
 0x132   : > { %v1106_v48 = vadd.f32 %v4201_v46, %v5024_v15  ;;  %v1097_v49 = vpop.f32.mrb[37].mxu0 }
 0x133   : > { %v1098_v51 = vadd.f32 %v5024_v15, %v1097_v49  ;;  %v4202_v0 = vpop.f32.mrb[38].mxu0 }
 0x134   : > { %v1374_v53 = vmax.f32 %v1106_v48, 0.0  ;;  %v1109_v54 = vadd.f32 %v4202_v0, %v5024_v15  ;;  %v1100_v1 = vpop.f32.mrb[39].mxu0  ;;  %v1045_v48 = vadd.f32 %v5017_v13, %v5024_v15 }
 0x135   : > { %v1372_v62 = vmax.f32 %v1098_v51, 0.0  ;;  %v1101_v63 = vadd.f32 %v5024_v15, %v1100_v1  ;;  %v1037_v51 = vadd.f32 %v5024_v15, %v5019_v14  ;;  %v1356_v1 = vmax.f32 %v1034_v43, 0.0 }
 0x136   : > { %v5103_v2 = vmax.f32 %v1350_v52, %v1374_v53  ;;  %v1375_v4 = vmax.f32 %v1109_v54, 0.0  ;;  %v1358_v52 = vmax.f32 %v1042_v61, 0.0 }
 0x137   : > { %v5105_v16 = vmax.f32 %v1348_v55, %v1372_v62  ;;  %v1373_v3 = vmax.f32 %v1101_v63, 0.0  ;;  %v1359_v63 = vmax.f32 %v1045_v48, 0.0 }
 0x138   : > { %v5109_v18 = vmax.f32 %v1351_v56, %v1375_v4  ;;  %v1357_v4 = vmax.f32 %v1037_v51, 0.0 }
 0x139   : > { %v5113_v22 = vmax.f32 %v1349_v11, %v1373_v3  ;;  %v4205_v23 = vpop.f32.mrb[40].mxu0 }
 0x13a   : > { %v1122_v25 = vadd.f32 %v4205_v23, %v5024_v15  ;;  %v1113_v26 = vpop.f32.mrb[41].mxu0 }
 0x13b   : > { %v1114_v58 = vadd.f32 %v5024_v15, %v1113_v26  ;;  %v4206_v5 = vpop.f32.mrb[42].mxu0 }
 0x13c   : > { %v1378_v29 = vmax.f32 %v1122_v25, 0.0  ;;  %v1125_v30 = vadd.f32 %v4206_v5, %v5024_v15  ;;  %v1116_v6 = vpop.f32.mrb[43].mxu0 }
 0x13d   : > { %v1376_v31 = vmax.f32 %v1114_v58, 0.0  ;;  %v1117_v32 = vadd.f32 %v5024_v15, %v1116_v6 }
 0x13e   : > { %v5123_v8 = vmax.f32 %v1354_v28, %v1378_v29  ;;  %v1379_v34 = vmax.f32 %v1125_v30, 0.0 }
 0x13f   : > { %v5125_v37 = vmax.f32 %v1352_v59, %v1376_v31  ;;  %v1377_v9 = vmax.f32 %v1117_v32, 0.0  ;;  %v5154_v32 = vld [vmem:[%s6920_s3] sm:$0xff]  }
 0x140   : > { %v5129_v40 = vmax.f32 %v1355_v33, %v1379_v34  ;;  %4299 = vmatprep.subr.bf16.mxu1 %v5154_v32 }
 0x141   : > { %v5133_v46 = vmax.f32 %v1353_v36, %v1377_v9  ;;  %v4209_v47 = vpop.f32.mrb[44].mxu0 }
 0x142   : > { %v1138_v49 = vadd.f32 %v4209_v47, %v5024_v15  ;;  %v1129_v50 = vpop.f32.mrb[45].mxu0  ;;  %v1504_v47 = vlaneseq }
 0x143   : > { %v1130_v0 = vadd.f32 %v5024_v15, %v1129_v50  ;;  %v4210_v10 = vpop.f32.mrb[46].mxu0 }
 0x144   : > { %v1382_v53 = vmax.f32 %v1138_v49, 0.0  ;;  %v1141_v54 = vadd.f32 %v4210_v10, %v5024_v15  ;;  %v1132_v12 = vpop.f32.mrb[47].mxu0  ;;  %v5164_v10 = vand.u32 127, %v1504_v47 }
 0x145   : > { %v1380_v55 = vmax.f32 %v1130_v0, 0.0  ;;  %v1133_v62 = vadd.f32 %v5024_v15, %v1132_v12 }
 0x146   : > { %v5143_v13 = vmax.f32 %v1358_v52, %v1382_v53  ;;  %v1383_v56 = vmax.f32 %v1141_v54, 0.0  ;;  %vm1506_vm1 = vcmp.lt.s32.totalorder %v5164_v10, 6  ;;  %vm1531_vm2 = vcmp.ge.s32.totalorder %v5164_v10, 6 }
 0x147   : > { %v5145_v11 = vmax.f32 %v1356_v1, %v1380_v55  ;;  %v1381_v14 = vmax.f32 %v1133_v62, 0.0  ;;  %v5175_v1 = vshrl.u32 %v1504_v47, 7  ;;  %vm1532_vm3 = vcmp.lt.s32.totalorder %v5164_v10, 12 }
 0x148   : > { %v5147_v3 = vmax.f32 %v1359_v63, %v1383_v56  ;;  %vm5312_vm5 = vmand %vm1531_vm2, %vm1532_vm3  ;;  %vm1633_vm6 = vcmp.ge.s32.totalorder %v5164_v10, 12  ;;  %vm1634_vm7 = vcmp.lt.s32.totalorder %v5164_v10, 18  ;;  %vm1733_vm9 = vcmp.ge.s32.totalorder %v5164_v10, 18 }
 0x149   : > { %6947 = vst [vmem:[#allocation2_spill] sm:$0xff] %v5145_v11  ;;  %v5149_v57 = vmax.f32 %v1357_v4, %v1381_v14  ;;  %v4213_v20 = vpop.f32.mrb[48].mxu0  ;;  %vm1560_vm4 = vcmp.lt.s32.totalorder %v5175_v1, 7  ;;  %vm1660_vm8 = vcmp.lt.s32.totalorder %v5175_v1, 6  ;;  %vm1734_vm10 = vcmp.lt.s32.totalorder %v5164_v10, 24  ;;  %vm5540_vm15 = vmand %vm1633_vm6, %vm1634_vm7 }
 0x14a   : > { %6948 = vst [vmem:[#allocation3_spill] sm:$0xff] %v5147_v3  ;;  %v1145_v23 = vpop.f32.mrb[49].mxu0  ;;  %v1154_v49 = vadd.f32 %v4213_v20, %v5024_v15  ;;  %vm1760_vm11 = vcmp.lt.s32.totalorder %v5175_v1, 5  ;;  %vm1833_vm12 = vcmp.ge.s32.totalorder %v5164_v10, 24  ;;  %vm1834_vm13 = vcmp.lt.s32.totalorder %v5164_v10, 30  ;;  %vm5600_vm0 = vmand %vm1733_vm9, %vm1734_vm10 }
 0x14b   : > { %6949 = vst [vmem:[#allocation4_spill] sm:$0xff] %v5149_v57  ;;  %v4214_v24 = vpop.f32.mrb[50].mxu0  ;;  %v5159_v50 = vadd.f32 %v5024_v15, %v1145_v23  ;;  %vm1860_vm14 = vcmp.lt.s32.totalorder %v5175_v1, 4  ;;  %vm5637_vm2 = vmand %vm1833_vm12, %vm1834_vm13  ;;  %vm4782_vm3 = vmmov 0  }
 0x14c   : > { %v1148_v25 = vpop.f32.mrb[51].mxu0  ;;  %v5162_v51 = vadd.f32 %v4214_v24, %v5024_v15 }
 0x14d   : > { %v5167_v52 = vadd.f32 %v5024_v15, %v1148_v25  ;;  %v1386_v25 = vmax.f32 %v1154_v49, 0.0 }
 0x151   : > { %v4217_v26 = vpop.f32.mrb[52].mxu0 }
 0x152   : > { %v1161_v27 = vpop.f32.mrb[53].mxu0  ;;  %v5170_v53 = vadd.f32 %v4217_v26, %v5024_v15  ;;  %v1384_v26 = vmax.f32 %v5159_v50, 0.0 }
 0x153   : > { %v4218_v58 = vpop.f32.mrb[54].mxu0  ;;  %v5173_v54 = vadd.f32 %v5024_v15, %v1161_v27  ;;  %v1387_v27 = vmax.f32 %v5162_v51, 0.0 }
 0x154   : > { %v1164_v5 = vpop.f32.mrb[55].mxu0  ;;  %v5178_v55 = vadd.f32 %v4218_v58, %v5024_v15 }
 0x155   : > { %v5181_v62 = vadd.f32 %v5024_v15, %v1164_v5  ;;  %v1385_v5 = vmax.f32 %v5167_v52, 0.0 }
 0x159   : > { %v4221_v28 = vpop.f32.mrb[56].mxu0 }
 0x15a   : > { %v1177_v29 = vpop.f32.mrb[57].mxu0  ;;  %v5184_v63 = vadd.f32 %v4221_v28, %v5024_v15 }
 0x15b   : > { %v4222_v30 = vpop.f32.mrb[58].mxu0  ;;  %v5187_v56 = vadd.f32 %v5024_v15, %v1177_v29 }
 0x15c   : > { %v1180_v6 = vpop.f32.mrb[59].mxu0  ;;  %v5190_v14 = vadd.f32 %v4222_v30, %v5024_v15 }
 0x15d   : > { %v5193_v20 = vadd.f32 %v5024_v15, %v1180_v6 }
 0x161   : > { %v4225_v59 = vpop.f32.mrb[60].mxu0 }
 0x162   : > { %v1193_v31 = vpop.f32.mrb[61].mxu0  ;;  %v5196_v23 = vadd.f32 %v4225_v59, %v5024_v15 }
 0x163   : > { %v4226_v33 = vpop.f32.mrb[62].mxu0  ;;  %v5199_v24 = vadd.f32 %v5024_v15, %v1193_v31 }
 0x164   : > { %v1196_v34 = vpop.f32.mrb[63].mxu0  ;;  %v5204_v58 = vadd.f32 %v4226_v33, %v5024_v15 }
 0x165   : > { %v5210_v30 = vadd.f32 %v5024_v15, %v1196_v34 }
 0x169   : > { %v4229_v36 = vpop.f32.mrb[64].mxu0 }
 0x16a   : > { %v1209_v9 = vpop.f32.mrb[65].mxu0  ;;  %v5223_v29 = vadd.f32 %v4229_v36, %v5024_v15 }
 0x16b   : > { %v4230_v61 = vpop.f32.mrb[66].mxu0  ;;  %v5226_v59 = vadd.f32 %v5024_v15, %v1209_v9 }
 0x16c   : > { %v1212_v43 = vpop.f32.mrb[67].mxu0  ;;  %v5231_v49 = vadd.f32 %v4230_v61, %v5024_v15 }
 0x16d   : > { %v5234_v50 = vadd.f32 %v5024_v15, %v1212_v43 }
 0x171   : > { %v4233_v48 = vpop.f32.mrb[68].mxu0 }
 0x172   : > { %v1225_v0 = vpop.f32.mrb[69].mxu0  ;;  %v5238_v36 = vadd.f32 %v4233_v48, %v5024_v15 }
 0x173   : > { %v4234_v12 = vpop.f32.mrb[70].mxu0  ;;  %v5241_v9 = vadd.f32 %v5024_v15, %v1225_v0 }
 0x174   : > { %v1228_v4 = vpop.f32.mrb[71].mxu0  ;;  %v5247_v61 = vadd.f32 %v4234_v12, %v5024_v15 }
 0x175   : > { %6950 = vst [vmem:[#allocation5_spill] sm:$0xff] %v5241_v9  ;;  %v5250_v43 = vadd.f32 %v5024_v15, %v1228_v4 }
 0x176   : > { %6951 = vst [vmem:[#allocation6_spill] sm:$0xff] %v5247_v61 }
 0x177   : > { %6952 = vst [vmem:[#allocation7_spill] sm:$0xff] %v5250_v43 }
 0x179   : > { %v4237_v34 = vpop.f32.mrb[72].mxu0 }
 0x17a   : > { %v1250_v31 = vadd.f32 %v4237_v34, %v5024_v15  ;;  %v1241_v33 = vpop.f32.mrb[73].mxu0 }
 0x17b   : > { %v1242_v51 = vadd.f32 %v5024_v15, %v1241_v33  ;;  %v4238_v52 = vpop.f32.mrb[74].mxu0 }
 0x17c   : > { %v1410_v6 = vmax.f32 %v1250_v31, 0.0  ;;  %v1253_v34 = vadd.f32 %v4238_v52, %v5024_v15  ;;  %v1244_v28 = vpop.f32.mrb[75].mxu0 }
 0x17d   : > { %v1408_v33 = vmax.f32 %v1242_v51, 0.0  ;;  %v1245_v48 = vadd.f32 %v5024_v15, %v1244_v28 }
 0x17e   : > { %v1458_v47 = vmax.f32 %v1386_v25, %v1410_v6  ;;  %v1411_v52 = vmax.f32 %v1253_v34, 0.0 }
 0x17f   : > { %v1456_v12 = vmax.f32 %v1384_v26, %v1408_v33  ;;  %v1409_v11 = vmax.f32 %v1245_v48, 0.0 }
 0x180   : > { %v5261_v28 = vmax.f32 %v5040_v35, %v1458_v47  ;;  %v1459_v0 = vmax.f32 %v1387_v27, %v1411_v52 }
 0x181   : > { %v5266_v6 = vmax.f32 %v5042_v38, %v1456_v12  ;;  %v1457_v34 = vmax.f32 %v1385_v5, %v1409_v11  ;;  %v4241_v57 = vpop.f32.mrb[76].mxu0 }
 0x182   : > { %6953 = vst [vmem:[#allocation8_spill] sm:$0xff] %v5261_v28  ;;  %v5271_v26 = vsel %vm1506_vm1, %v5261_v28, 0.0  ;;  %v1536_v33 = vrot.slane %v5261_v28, 1  ;;  %v1257_v47 = vpop.f32.mrb[77].mxu0  ;;  %v5287_v31 = vmax.f32 %v5046_v41, %v1459_v0  ;;  %v1266_v3 = vadd.f32 %v4241_v57, %v5024_v15 }
 0x183   : > { %6954 = vst [vmem:[#allocation9_spill] sm:$0xff] %v5266_v6  ;;  %v5280_v38 = vsel %vm1506_vm1, %v5266_v6, 0.0  ;;  %v4242_v52 = vpop.f32.mrb[78].mxu0  ;;  %v5290_v51 = vmax.f32 %v5053_v44, %v1457_v34  ;;  %v1258_v48 = vadd.f32 %v5024_v15, %v1257_v47  ;;  %v6961_v34 = vmax.f32 %v5173_v54, 0.0 }
 0x184   : > { %6955 = vst [vmem:[#allocation10_spill] sm:$0xff] %v5280_v38  ;;  %v1260_v4 = vpop.f32.mrb[79].mxu0  ;;  %v1269_v11 = vadd.f32 %v4242_v52, %v5024_v15  ;;  %v5299_v12 = vsel %vm1506_vm1, %v5287_v31, 0.0  ;;  %v1414_v27 = vmax.f32 %v1266_v3, 0.0  ;;  %v6959_v43 = vrot.slane %v5287_v31, 1 }
 0x185   : > { %6956 = vst [vmem:[#allocation11_spill] sm:$0xff] %v5290_v51  ;;  %v1261_v5 = vadd.f32 %v5024_v15, %v1260_v4  ;;  %v1508_v57 = vsel %vm1506_vm1, %v5290_v51, 0.0  ;;  %v6933_v47 = vrot.slane %v5290_v51, 1  ;;  %v1412_v44 = vmax.f32 %v1258_v48, 0.0 }
 0x186   : > { %v1415_v0 = vmax.f32 %v1269_v11, 0.0  ;;  %v5328_v6 = vsel %vm1560_vm4, %v1536_v33, %v6959_v43  ;;  %v6960_v3 = vmax.f32 %v5170_v53, 0.0  ;;  %v6963_v51 = vmax.f32 %v5178_v55, 0.0 }
 0x187   : > { %v1582_v35 = vsel %vm1560_vm4, %v6933_v47, %v1536_v33  ;;  %v1413_v41 = vmax.f32 %v1261_v5, 0.0  ;;  %v1460_v52 = vmax.f32 %v6961_v34, %v1412_v44  ;;  %v6964_v43 = vmax.f32 %v5181_v62, 0.0 }
 0x188   : > { %v1586_v25 = vsel %vm5312_vm5, %v1582_v35, 0.0  ;;  %v1462_v48 = vmax.f32 %v6960_v3, %v1414_v27  ;;  %v1463_v61 = vmax.f32 %v6963_v51, %v1415_v0  ;;  %v6965_v3 = vmax.f32 %v5184_v63, 0.0 }
 0x189   : > { %v4245_v38 = vpop.f32.mrb[80].mxu0  ;;  %v5337_v5 = vadd.f32 %v1586_v25, %v1508_v57  ;;  %v1461_v33 = vmax.f32 %v6964_v43, %v1413_v41  ;;  %v5348_v54 = vmax.f32 %v5065_v17, %v1460_v52 }
 0x18a   : > { %v1282_v47 = vadd.f32 %v4245_v38, %v5024_v15  ;;  %v1273_v11 = vpop.f32.mrb[81].mxu0  ;;  %v5345_v53 = vmax.f32 %v5063_v7, %v1462_v48  ;;  %v5352_v44 = vmax.f32 %v5069_v19, %v1463_v61  ;;  %v6966_v48 = vmax.f32 %v5187_v56, 0.0 }
 0x18b   : > { %6962 = vst [vmem:[#allocation12_spill] sm:$0xff] %v5337_v5  ;;  %v1274_v9 = vadd.f32 %v5024_v15, %v1273_v11  ;;  %v4246_v35 = vpop.f32.mrb[82].mxu0  ;;  %v5355_v55 = vmax.f32 %v5073_v21, %v1461_v33  ;;  %v5370_v21 = vsel %vm1506_vm1, %v5348_v54, 0.0 }
 0x18c   : > { %v1418_v27 = vmax.f32 %v1282_v47, 0.0  ;;  %v1285_v38 = vadd.f32 %v4246_v35, %v5024_v15  ;;  %v1276_v25 = vpop.f32.mrb[83].mxu0  ;;  %v5361_v7 = vsel %vm1506_vm1, %v5345_v53, 0.0  ;;  %v6938_v17 = vrot.slane %v5345_v53, 1 }
 0x18d   : > { %v1416_v62 = vmax.f32 %v1274_v9, 0.0  ;;  %v1277_v51 = vadd.f32 %v5024_v15, %v1276_v25  ;;  %v6941_v9 = vrot.slane %v5348_v54, 1  ;;  %v5379_v47 = vsel %vm1506_vm1, %v5352_v44, 0.0 }
 0x18e   : > { %v1512_v43 = vsel %vm1506_vm1, %v5355_v55, 0.0  ;;  %v6942_v35 = vrot.slane %v5355_v55, 1  ;;  %v1466_v41 = vmax.f32 %v6965_v3, %v1418_v27  ;;  %v1419_v57 = vmax.f32 %v1285_v38, 0.0 }
 0x18f   : > { %v1464_v11 = vmax.f32 %v6966_v48, %v1416_v62  ;;  %v1417_v34 = vmax.f32 %v1277_v51, 0.0  ;;  %v6967_v51 = vmax.f32 %v5190_v14, 0.0  ;;  %v6970_v14 = vmax.f32 %v5199_v24, 0.0 }
 0x190   : > { %v1578_v25 = vsel %vm1560_vm4, %v6942_v35, %v6938_v17  ;;  %v5408_v38 = vmax.f32 %v5083_v60, %v1466_v41  ;;  %v6983_v35 = vrot.slane %v5287_v31, 3 }
 0x191   : > { %v4249_v33 = vpop.f32.mrb[84].mxu0  ;;  %v1590_v56 = vsel %vm5312_vm5, %v1578_v25, 0.0  ;;  %v5411_v62 = vmax.f32 %v5085_v39, %v1464_v11  ;;  %v1467_v3 = vmax.f32 %v6967_v51, %v1419_v57  ;;  %v6969_v51 = vmax.f32 %v5196_v23, 0.0 }
 0x192   : > { %v1289_v52 = vpop.f32.mrb[85].mxu0  ;;  %v1298_v19 = vadd.f32 %v4249_v33, %v5024_v15  ;;  %v5415_v48 = vadd.f32 %v1590_v56, %v1512_v43  ;;  %v6968_v33 = vmax.f32 %v5193_v20, 0.0  ;;  %v5422_v25 = vsel %vm1506_vm1, %v5408_v38, 0.0 }
 0x193   : > { %v4250_v61 = vpop.f32.mrb[86].mxu0  ;;  %v1290_v0 = vadd.f32 %v5024_v15, %v1289_v52  ;;  %v6939_v60 = vrot.slane %v5408_v38, 1  ;;  %v5431_v20 = vsel %vm1506_vm1, %v5411_v62, 0.0  ;;  %v5441_v11 = vmax.f32 %v5089_v42, %v1467_v3 }
 0x194   : > { %v1301_v63 = vadd.f32 %v4250_v61, %v5024_v15  ;;  %v1292_v27 = vpop.f32.mrb[87].mxu0  ;;  %v1465_v52 = vmax.f32 %v6968_v33, %v1417_v34  ;;  %v1422_v17 = vmax.f32 %v1298_v19, 0.0  ;;  %v6974_v57 = vrot.slane %v5287_v31, 1 }
 0x195   : > { %v1420_v61 = vmax.f32 %v1290_v0, 0.0  ;;  %v1293_v19 = vadd.f32 %v5024_v15, %v1292_v27  ;;  %v5456_v42 = vsel %vm1506_vm1, %v5441_v11, 0.0 }
 0x196   : > { %v5444_v43 = vmax.f32 %v5093_v45, %v1465_v52  ;;  %v1470_v33 = vmax.f32 %v6969_v51, %v1422_v17  ;;  %v1423_v39 = vmax.f32 %v1301_v63, 0.0  ;;  %v6971_v45 = vmax.f32 %v5204_v58, 0.0 }
 0x197   : > { %v1468_v41 = vmax.f32 %v6970_v14, %v1420_v61 }
 0x198   : > { %v1516_v63 = vsel %vm1506_vm1, %v5444_v43, 0.0  ;;  %v6940_v27 = vrot.slane %v5444_v43, 1  ;;  %v5474_v23 = vmax.f32 %v5103_v2, %v1470_v33  ;;  %v1471_v2 = vmax.f32 %v6971_v45, %v1423_v39 }
 0x199   : > { %v4253_v56 = vpop.f32.mrb[88].mxu0  ;;  %v5477_v3 = vmax.f32 %v5105_v16, %v1468_v41  ;;  %v1421_v33 = vmax.f32 %v1293_v19, 0.0  ;;  %v6973_v19 = vmax.f32 %v5210_v30, 0.0 }
 0x19a   : > { %v5451_v0 = vpop.f32.mrb[89].mxu0  ;;  %v1574_v24 = vsel %vm1560_vm4, %v6940_v27, %v6939_v60  ;;  %v1314_v16 = vadd.f32 %v4253_v56, %v5024_v15  ;;  %v5496_v51 = vsel %vm1506_vm1, %v5474_v23, 0.0  ;;  %v5519_v39 = vmax.f32 %v5109_v18, %v1471_v2 }
 0x19b   : > { %v5461_v17 = vpop.f32.mrb[90].mxu0  ;;  %v1594_v41 = vsel %vm5312_vm5, %v1574_v24, 0.0  ;;  %6972 = vst [vmem:[#allocation13_spill] sm:$0xff] %v5496_v51  ;;  %v5509_v56 = vsel %vm1506_vm1, %v5477_v3, 0.0  ;;  %v1469_v60 = vmax.f32 %v6973_v19, %v1421_v33  ;;  %v1580_v24 = vsel %vm1560_vm4, %v6974_v57, %v6941_v9 }
 0x19c   : > { %v5469_v61 = vpop.f32.mrb[91].mxu0  ;;  %v5502_v58 = vadd.f32 %v1594_v41, %v1516_v63  ;;  %v1426_v27 = vmax.f32 %v1314_v16, 0.0  ;;  %v1587_v63 = vsel %vm5312_vm5, %v5328_v6, 0.0  ;;  %v1588_v18 = vsel %vm5312_vm5, %v1580_v24, 0.0 }
 0x19d   : > { %v6977_v2 = vrot.slane %v5348_v54, 2  ;;  %v6978_v57 = vrot.slane %v5287_v31, 2  ;;  %v6980_v16 = vrot.slane %v5261_v28, 2  ;;  %v5561_v52 = vsel %vm1506_vm1, %v5519_v39, 0.0 }
 0x19e   : > { %v5570_v14 = vmax.f32 %v5113_v22, %v1469_v60  ;;  %v1611_v5 = vadd.f32 %v1587_v63, %v5271_v26  ;;  %v1612_v51 = vadd.f32 %v1588_v18, %v5299_v12  ;;  %v6982_v9 = vrot.slane %v5348_v54, 3 }
 0x19f   : > { %v1680_v33 = vsel %vm1660_vm8, %v6978_v57, %v6977_v2  ;;  %v6979_v6 = vmov %v6978_v57 }
 0x1a0   : > { %v1681_v19 = vsel %vm1660_vm8, %v6980_v16, %v6979_v6  ;;  %v6981_v6 = vmax.f32 %v5223_v29, 0.0  ;;  %v1688_v2 = vsel %vm5540_vm15, %v1680_v33, 0.0  ;;  %v1780_v22 = vsel %vm1760_vm11, %v6983_v35, %v6982_v9 }
 0x1a1   : > { %v5516_v41 = vpop.f32.mrb[92].mxu0  ;;  %v1687_v34 = vsel %vm5540_vm15, %v1681_v19, 0.0  ;;  %v1520_v29 = vsel %vm1506_vm1, %v5570_v14, 0.0  ;;  %v6943_v26 = vrot.slane %v5570_v14, 1  ;;  %v1712_v33 = vadd.f32 %v1688_v2, %v1612_v51 }
 0x1a2   : > { %v5529_v45 = vpop.f32.mrb[93].mxu0  ;;  %v1474_v16 = vmax.f32 %v6981_v6, %v1426_v27  ;;  %v1711_v18 = vadd.f32 %v1687_v34, %v1611_v5  ;;  %v6986_v35 = vrot.slane %v5474_v23, 1  ;;  %v6988_v5 = vrot.slane %v5261_v28, 3 }
 0x1a3   : > { %v5556_v24 = vpop.f32.mrb[94].mxu0  ;;  %v1788_v51 = vsel %vm5600_vm0, %v1780_v22, 0.0  ;;  %v6989_v2 = vrot.slane %v5348_v54, 4  ;;  %v6990_v6 = vrot.slane %v5287_v31, 4  ;;  %v4714_v22 = vld [vmem:[%s6920_s3 + $0x90] sm:$0xff]  }
 0x1a4   : > { %v5566_v57 = vpop.f32.mrb[95].mxu0  ;;  %v5594_v63 = vmax.f32 %v5123_v8, %v1474_v16  ;;  %v1570_v19 = vsel %vm1560_vm4, %v6943_v26, %v6986_v35  ;;  %v6987_v8 = vrot.slane %v5287_v31, 3  ;;  %v1812_v26 = vadd.f32 %v1788_v51, %v1712_v33 }
 0x1a5   : > { %v1880_v16 = vsel %vm1860_vm14, %v6990_v6, %v6989_v2  ;;  %v1598_v35 = vsel %vm5312_vm5, %v1570_v19, 0.0  ;;  %v6997_v31 = vrot.slane %v5348_v54, 1 }
 0x1a6   : > { %v1781_v34 = vsel %vm1760_vm11, %v6988_v5, %v6987_v8  ;;  %v5629_v27 = vsel %vm1506_vm1, %v5594_v63, 0.0  ;;  %v5641_v2 = vadd.f32 %v1598_v35, %v1520_v29  ;;  %v6994_v5 = vmov %v6990_v6 }
 0x1a7   : > { %6991 = vst [vmem:[#allocation14_spill] sm:$0xff] %v5629_v27  ;;  %v1787_v60 = vsel %vm5600_vm0, %v1781_v34, 0.0  ;;  %v6995_v8 = vrot.slane %v5261_v28, 4  ;;  %v1888_v29 = vsel %vm5637_vm2, %v1880_v16, 0.0  ;;  %v1306_v6 = vadd.f32 %v5024_v15, %v5451_v0 }
 0x1a8   : > { %v1811_v12 = vadd.f32 %v1787_v60, %v1711_v18  ;;  %v1317_v60 = vadd.f32 %v5461_v17, %v5024_v15  ;;  %v6996_v18 = vrot.slane %v5355_v55, 1  ;;  %v1912_v51 = vadd.f32 %v1888_v29, %v1812_v26 }
 0x1a9   : > { %v1881_v27 = vsel %vm1860_vm14, %v6995_v8, %v6994_v5  ;;  %v6999_v8 = vrot.slane %v5355_v55, 2  ;;  %v1424_v17 = vmax.f32 %v1306_v6, 0.0  ;;  %v7002_v6 = vrot.slane %v5345_v53, 3 }
 0x1aa   : > { %v1887_v35 = vsel %vm5637_vm2, %v1881_v27, 0.0  ;;  %v1579_v33 = vsel %vm1560_vm4, %v6997_v31, %v6996_v18  ;;  %v6998_v27 = vrot.slane %v5345_v53, 2  ;;  %v1427_v5 = vmax.f32 %v1317_v60, 0.0 }
 0x1ab   : > { %v1911_v34 = vadd.f32 %v1887_v35, %v1811_v12  ;;  %v1589_v16 = vsel %vm5312_vm5, %v1579_v33, 0.0  ;;  %v7000_v28 = vmov %v6999_v8  ;;  %v7001_v18 = vrot.slane %v5348_v54, 2 }
 0x1ac   : > { %v1678_v0 = vsel %vm1660_vm8, %v6999_v8, %v6998_v27  ;;  %v1613_v19 = vadd.f32 %v1589_v16, %v5370_v21  ;;  %v7003_v60 = vrot.slane %v5355_v55, 3  ;;  %v7004_v31 = vmax.f32 %v5226_v59, 0.0 }
 0x1ad   : > { %v1679_v26 = vsel %vm1660_vm8, %v7001_v18, %v7000_v28  ;;  %v5682_v12 = vpack.c.bf16 %v1912_v51, %v1911_v34  ;;  %v1690_v35 = vsel %vm5540_vm15, %v1678_v0, 0.0  ;;  %v7005_v28 = vmax.f32 %v5231_v49, 0.0 }
 0x1ae   : > { %v1689_v29 = vsel %vm5540_vm15, %v1679_v26, 0.0  ;;  %v1778_v21 = vsel %vm1760_vm11, %v7003_v60, %v7002_v6  ;;  %v1472_v33 = vmax.f32 %v7004_v31, %v1424_v17  ;;  %v1714_v16 = vadd.f32 %v1690_v35, %v5415_v48 }
 0x1af   : > { %v1475_v34 = vmax.f32 %v7005_v28, %v1427_v5  ;;  %v1713_v51 = vadd.f32 %v1689_v29, %v1613_v19  ;;  %4275 = vmatprep.mubr.bf16.mxu1 %v5682_v12  ;;  %v7006_v27 = vmov %v7003_v60  ;;  %v7007_v8 = vrot.slane %v5348_v54, 3 }
 0x1b0   : > { %v1790_v18 = vsel %vm5600_vm0, %v1778_v21, 0.0  ;;  %v7008_v59 = vrot.slane %v5345_v53, 4  ;;  %v7009_v49 = vrot.slane %v5355_v55, 4  ;;  %v7011_v17 = vrot.slane %v5348_v54, 4 }
 0x1b1   : > { %v1779_v0 = vsel %vm1760_vm11, %v7007_v8, %v7006_v27  ;;  %v5721_v26 = vmax.f32 %v5125_v37, %v1472_v33  ;;  %v5724_v29 = vmax.f32 %v5129_v40, %v1475_v34  ;;  %v1814_v6 = vadd.f32 %v1790_v18, %v1714_v16 }
 0x1b2   : > { %v1878_v19 = vsel %vm1860_vm14, %v7009_v49, %v7008_v59  ;;  %v7010_v48 = vmov %v7009_v49  ;;  %v1789_v35 = vsel %vm5600_vm0, %v1779_v0, 0.0  ;;  %v1309_v55 = vadd.f32 %v5024_v15, %v5469_v61 }
 0x1b3   : > { %v1879_v5 = vsel %vm1860_vm14, %v7011_v17, %v7010_v48  ;;  %v1813_v60 = vadd.f32 %v1789_v35, %v1713_v51  ;;  %v1890_v54 = vsel %vm5637_vm2, %v1878_v19, 0.0  ;;  %v5737_v37 = vsel %vm1506_vm1, %v5721_v26, 0.0 }
 0x1b4   : > { %v1889_v21 = vsel %vm5637_vm2, %v1879_v5, 0.0  ;;  %v1550_v40 = vrot.slane %v5721_v26, 1  ;;  %v1652_v31 = vrot.slane %v5721_v26, 2  ;;  %v1752_v33 = vrot.slane %v5721_v26, 3 }
 0x1b5   : > { %v1852_v28 = vrot.slane %v5721_v26, 4  ;;  %v5746_v34 = vsel %vm1506_vm1, %v5724_v29, 0.0  ;;  %v1913_v8 = vadd.f32 %v1889_v21, %v1813_v60  ;;  %v1914_v0 = vadd.f32 %v1890_v54, %v1814_v6 }
 0x1b6   : > { %v1425_v18 = vmax.f32 %v1309_v55, 0.0  ;;  %v1330_v59 = vadd.f32 %v5516_v41, %v5024_v15  ;;  %v7012_v49 = vrot.slane %v5411_v62, 1  ;;  %v7013_v19 = vrot.slane %v5352_v44, 1  ;;  %v4705_v55 = vld [vmem:[%s6920_s3 + $0x8] sm:$0xff]  }
 0x1b7   : > { %v7015_v5 = vrot.slane %v5345_v53, 1  ;;  %v5766_v60 = vpack.c.bf16 %v1914_v0, %v1913_v8  ;;  %v7016_v41 = vrot.slane %v5411_v62, 2  ;;  %v7017_v21 = vrot.slane %v5352_v44, 2 }
 0x1b8   : > { %v1576_v48 = vsel %vm1560_vm4, %v7013_v19, %v7012_v49  ;;  %v7014_v17 = vmov %v7013_v19  ;;  %v7018_v8 = vmax.f32 %v5234_v50, 0.0  ;;  %v1430_v49 = vmax.f32 %v1330_v59, 0.0 }
 0x1b9   : > { %v1577_v35 = vsel %vm1560_vm4, %v7015_v5, %v7014_v17  ;;  %v1592_v15 = vsel %vm5312_vm5, %v1576_v48, 0.0  ;;  %v1676_v54 = vsel %vm1660_vm8, %v7017_v21, %v7016_v41  ;;  %4276 = vmatmul.mubr.bf16.vlgmr.msra.gmra.mrb[0].mxu1 %v5766_v60  ;;  %v7019_v48 = vmov %v7017_v21 }
 0x1ba   : > { %v1591_v6 = vsel %vm5312_vm5, %v1577_v35, 0.0  ;;  %v1473_v0 = vmax.f32 %v7018_v8, %v1425_v18  ;;  %v1616_v17 = vadd.f32 %v1592_v15, %v5379_v47  ;;  %v7020_v5 = vrot.slane %v5345_v53, 2  ;;  %4300 = vmatpush3.bf16.msra.mxu1 %v5154_v32 }
 0x1bb   : > { %v1615_v19 = vadd.f32 %v1591_v6, %v5361_v7  ;;  %v1692_v41 = vsel %vm5540_vm15, %v1676_v54, 0.0  ;;  %v7021_v50 = vrot.slane %v5411_v62, 3  ;;  %v7022_v18 = vrot.slane %v5352_v44, 3  ;;  %4301 = vmatprep.subr.bf16.mxu1 %v4705_v55 }
 0x1bc   : > { %v1677_v35 = vsel %vm1660_vm8, %v7020_v5, %v7019_v48  ;;  %v7024_v59 = vrot.slane %v5345_v53, 3  ;;  %v5807_v15 = vmax.f32 %v5133_v46, %v1473_v0  ;;  %v7025_v21 = vmax.f32 %v5238_v36, 0.0  ;;  %v4706_v0 = vld [vmem:[%s6920_s3 + $0x10] sm:$0xff]  }
 0x1bd   : > { %v1776_v7 = vsel %vm1760_vm11, %v7022_v18, %v7021_v50  ;;  %v7023_v47 = vmov %v7022_v18  ;;  %v1691_v8 = vsel %vm5540_vm15, %v1677_v35, 0.0  ;;  %v1716_v48 = vadd.f32 %v1692_v41, %v1616_v17 }
 0x1be   : > { %v1777_v6 = vsel %vm1760_vm11, %v7024_v59, %v7023_v47  ;;  %v1478_v54 = vmax.f32 %v7025_v21, %v1430_v49  ;;  %v1715_v5 = vadd.f32 %v1691_v8, %v1615_v19  ;;  %v1792_v18 = vsel %vm5600_vm0, %v1776_v7, 0.0  ;;  %4302 = vmatpush3.bf16.msra.mxu1 %v4705_v55 }
 0x1bf   : > { %v1791_v50 = vsel %vm5600_vm0, %v1777_v6, 0.0  ;;  %v7026_v47 = vrot.slane %v5411_v62, 4  ;;  %v7027_v46 = vrot.slane %v5352_v44, 4  ;;  %v1524_v32 = vsel %vm1506_vm1, %v5807_v15, 0.0  ;;  %4303 = vmatprep.subr.bf16.mxu1 %v4706_v0 }
 0x1c0   : > { %v1551_v49 = vrot.slane %v5807_v15, 1  ;;  %v1653_v19 = vrot.slane %v5807_v15, 2  ;;  %v1753_v17 = vrot.slane %v5807_v15, 3  ;;  %v1853_v35 = vrot.slane %v5807_v15, 4 }
 0x1c1   : > { %v1876_v36 = vsel %vm1860_vm14, %v7027_v46, %v7026_v47  ;;  %v5835_v41 = vmax.f32 %v5143_v13, %v1478_v54  ;;  %v1815_v7 = vadd.f32 %v1791_v50, %v1715_v5  ;;  %v1816_v59 = vadd.f32 %v1792_v18, %v1716_v48  ;;  %v4771_v54 = vld [vmem:[%s6919_s2] ss:$0 sm:$0xff]  ;;  %v4707_v18 = vld [vmem:[%s6920_s3 + $0x18] sm:$0xff]  }
 0x1c2   : > { %v7028_v6 = vrot.slane %v5594_v63, 1  ;;  %v7029_v8 = vmov %v7027_v46  ;;  %v7030_v47 = vrot.slane %v5345_v53, 4  ;;  %v1892_v13 = vsel %vm5637_vm2, %v1876_v36, 0.0  ;;  %4304 = vmatpush3.bf16.msra.mxu1 %v4706_v0 }
 0x1c3   : > { %v1322_v48 = vadd.f32 %v4771_v54, %v5529_v45  ;;  %v5860_v53 = vsel %vm1506_vm1, %v5835_v41, 0.0  ;;  %v1556_v44 = vrot.slane %v5835_v41, 1  ;;  %v1333_v27 = vadd.f32 %v4771_v54, %v5556_v24  ;;  %4305 = vmatprep.subr.bf16.mxu1 %v4707_v18 }
 0x1c4   : > { %v1566_v21 = vsel %vm1560_vm4, %v1551_v49, %v7028_v6  ;;  %v1877_v46 = vsel %vm1860_vm14, %v7030_v47, %v7029_v8  ;;  %v1916_v8 = vadd.f32 %v1892_v13, %v1816_v59  ;;  %v7031_v50 = vrot.slane %v5444_v43, 1 }
 0x1c5   : > { %v1602_v5 = vsel %vm5312_vm5, %v1566_v21, 0.0  ;;  %v1891_v6 = vsel %vm5637_vm2, %v1877_v46, 0.0  ;;  %v1428_v47 = vmax.f32 %v1322_v48, 0.0  ;;  %v7032_v16 = vrot.slane %v5411_v62, 1 }
 0x1c6   : > { %v5867_v36 = vadd.f32 %v1602_v5, %v1524_v32  ;;  %v1915_v21 = vadd.f32 %v1891_v6, %v1815_v7  ;;  %v7033_v5 = vrot.slane %v5408_v38, 2  ;;  %v7034_v45 = vrot.slane %v5444_v43, 2  ;;  %4306 = vmatpush3.bf16.msra.mxu1 %v4707_v18 }
 0x1c7   : > { %v1575_v32 = vsel %vm1560_vm4, %v7032_v16, %v7031_v50  ;;  %v7036_v59 = vrot.slane %v5411_v62, 2  ;;  %v7037_v46 = vrot.slane %v5408_v38, 3  ;;  %v7038_v13 = vrot.slane %v5444_v43, 3  ;;  %v7039_v50 = vld [vmem:[#allocation5_spill] sm:$0xff] }
 0x1c8   : > { %v1674_v55 = vsel %vm1660_vm8, %v7034_v45, %v7033_v5  ;;  %v7035_v7 = vmov %v7034_v45  ;;  %v5898_v48 = vpack.c.bf16 %v1916_v8, %v1915_v21  ;;  %v7040_v6 = vmax.f32 %v7039_v50, 0.0 }
 0x1c9   : > { %v1675_v24 = vsel %vm1660_vm8, %v7036_v59, %v7035_v7  ;;  %v1774_v16 = vsel %vm1760_vm11, %v7038_v13, %v7037_v46  ;;  %v1431_v5 = vmax.f32 %v1333_v27, 0.0  ;;  %v1593_v51 = vsel %vm5312_vm5, %v1575_v32, 0.0  ;;  %v4708_v7 = vld [vmem:[%s6920_s3 + $0x20] sm:$0xff]  }
 0x1ca   : > { %v1476_v45 = vmax.f32 %v7040_v6, %v1428_v47  ;;  %v1617_v59 = vadd.f32 %v1593_v51, %v5431_v20  ;;  %v1693_v46 = vsel %vm5540_vm15, %v1675_v24, 0.0  ;;  %v1694_v0 = vsel %vm5540_vm15, %v1674_v55, 0.0  ;;  %4279 = vmatprep.mubr.bf16.mxu1 %v5898_v48  ;;  %v7043_v47 = vld [vmem:[#allocation2_spill] sm:$0xff]  ;;  %4307 = vmatprep.subr.bf16.mxu1 %v4708_v7 }
 0x1cb   : > { %v7041_v21 = vmov %v7038_v13  ;;  %v7042_v27 = vrot.slane %v5411_v62, 3  ;;  %v7044_v13 = vld [vmem:[#allocation6_spill] sm:$0xff]  ;;  %v1718_v24 = vadd.f32 %v1694_v0, %v5502_v58  ;;  %v1794_v6 = vsel %vm5600_vm0, %v1774_v16, 0.0  ;;  %4308 = vmatpush3.bf16.msra.mxu1 %v4708_v7 }
 0x1cc   : > { %v5920_v32 = vmax.f32 %v7043_v47, %v1476_v45  ;;  %v7045_v20 = vmax.f32 %v7044_v13, 0.0  ;;  %v1717_v50 = vadd.f32 %v1693_v46, %v1617_v59  ;;  %v7046_v61 = vrot.slane %v5408_v38, 4 }
 0x1cd   : > { %v1775_v8 = vsel %vm1760_vm11, %v7042_v27, %v7041_v21  ;;  %v7047_v21 = vrot.slane %v5444_v43, 4  ;;  %v1818_v47 = vadd.f32 %v1794_v6, %v1718_v24  ;;  %v7056_v7 = vrot.slane %v5408_v38, 1 }
 0x1ce   : > { %v1479_v51 = vmax.f32 %v7045_v20, %v1431_v5  ;;  %v1793_v55 = vsel %vm5600_vm0, %v1775_v8, 0.0  ;;  %v7049_v5 = vrot.slane %v5411_v62, 4  ;;  %v5944_v59 = vsel %vm1506_vm1, %v5920_v32, 0.0  ;;  %v4709_v62 = vld [vmem:[%s6920_s3 + $0x28] sm:$0xff]  }
 0x1cf   : > { %v1874_v45 = vsel %vm1860_vm14, %v7047_v21, %v7046_v61  ;;  %v7048_v27 = vmov %v7047_v21  ;;  %v7050_v61 = vld [vmem:[#allocation3_spill] sm:$0xff]  ;;  %v1817_v8 = vadd.f32 %v1793_v55, %v1717_v50  ;;  %v1325_v21 = vadd.f32 %v4771_v54, %v5566_v57  ;;  %4309 = vmatprep.subr.bf16.mxu1 %v4709_v62 }
 0x1d0   : > { %v1875_v58 = vsel %vm1860_vm14, %v7049_v5, %v7048_v27  ;;  %v5954_v18 = vmax.f32 %v7050_v61, %v1479_v51  ;;  %v1894_v20 = vsel %vm5637_vm2, %v1874_v45, 0.0  ;;  %v7051_v27 = vrot.slane %v5477_v3, 1  ;;  %v7053_v61 = vld [vmem:[#allocation9_spill] sm:$0xff]  ;;  %v7059_v55 = vld [vmem:[#allocation7_spill] sm:$0xff]  ;;  %4310 = vmatpush3.bf16.msra.mxu1 %v4709_v62 }
 0x1d1   : > { %v1893_v13 = vsel %vm5637_vm2, %v1875_v58, 0.0  ;;  %v7052_v5 = vrot.slane %v5441_v11, 1  ;;  %v1918_v6 = vadd.f32 %v1894_v20, %v1818_v47  ;;  %v1429_v45 = vmax.f32 %v1325_v21, 0.0  ;;  %v4710_v58 = vld [vmem:[%s6920_s3 + $0x30] sm:$0xff]  }
 0x1d2   : > { %v1530_v51 = vsel %vm1506_vm1, %v5954_v18, 0.0  ;;  %v6946_v24 = vrot.slane %v5954_v18, 1  ;;  %v1917_v54 = vadd.f32 %v1893_v13, %v1817_v8  ;;  %v7055_v50 = vrot.slane %v5441_v11, 1  ;;  %4311 = vmatprep.subr.bf16.mxu1 %v4710_v58 }
 0x1d3   : > { %v1572_v43 = vsel %vm1560_vm4, %v7052_v5, %v7051_v27  ;;  %v7054_v27 = vrot.slane %v7053_v61, 1  ;;  %v7057_v13 = vrot.slane %v5477_v3, 2  ;;  %v7058_v20 = vrot.slane %v5441_v11, 2 }
 0x1d4   : > { %v1573_v8 = vsel %vm1560_vm4, %v7056_v7, %v7055_v50  ;;  %v1596_v47 = vsel %vm5312_vm5, %v1572_v43, 0.0  ;;  %v5999_v57 = vpack.c.bf16 %v1918_v6, %v1917_v54  ;;  %v7065_v6 = vrot.slane %v5441_v11, 3  ;;  %4312 = vmatpush3.bf16.msra.mxu1 %v4710_v58  ;;  %v6072_v58 = vld [vmem:[%s6920_s3 + $0x80] sm:$0xff]  }
 0x1d5   : > { %v1584_v5 = vsel %vm1560_vm4, %v6946_v24, %v7054_v27  ;;  %v1672_v21 = vsel %vm1660_vm8, %v7058_v20, %v7057_v13  ;;  %v7060_v24 = vmax.f32 %v7059_v55, 0.0  ;;  %v1595_v50 = vsel %vm5312_vm5, %v1573_v8, 0.0 }
 0x1d6   : > { %v1608_v27 = vsel %vm5312_vm5, %v1584_v5, 0.0  ;;  %v1619_v43 = vadd.f32 %v1595_v50, %v5422_v25  ;;  %v1620_v46 = vadd.f32 %v1596_v47, %v5456_v42  ;;  %v7061_v16 = vmov %v7058_v20  ;;  %4280 = vmatmul.mubr.bf16.gmra.mrb[4].mxu1 %v5999_v57 }
 0x1d7   : > { %v1477_v0 = vmax.f32 %v7060_v24, %v1429_v45  ;;  %v6005_v7 = vadd.f32 %v1608_v27, %v1530_v51  ;;  %v7062_v13 = vrot.slane %v5408_v38, 2  ;;  %v7063_v24 = vld [vmem:[#allocation4_spill] sm:$0xff]  ;;  %v1696_v25 = vsel %vm5540_vm15, %v1672_v21, 0.0 }
 0x1d8   : > { %v7064_v42 = vrot.slane %v5477_v3, 3  ;;  %v1720_v62 = vadd.f32 %v1696_v25, %v1620_v46  ;;  %v7066_v5 = vmov %v7065_v6  ;;  %v7067_v8 = vrot.slane %v5408_v38, 3 }
 0x1d9   : > { %v1673_v54 = vsel %vm1660_vm8, %v7062_v13, %v7061_v16  ;;  %v6017_v55 = vmax.f32 %v7063_v24, %v1477_v0  ;;  %v4711_v16 = vld [vmem:[%s6920_s3 + $0x38] sm:$0xff]   ;;  %v7068_v24 = vrot.slane %v5477_v3, 4 }
 0x1da   : > { %v1695_v51 = vsel %vm5540_vm15, %v1673_v54, 0.0  ;;  %v1772_v45 = vsel %vm1760_vm11, %v7065_v6, %v7064_v42  ;;  %v1773_v47 = vsel %vm1760_vm11, %v7067_v8, %v7066_v5  ;;  %4313 = vmatprep.subr.bf16.mxu1 %v4711_v16 }
 0x1db   : > { %v1719_v0 = vadd.f32 %v1695_v51, %v1619_v43  ;;  %v1796_v20 = vsel %vm5600_vm0, %v1772_v45, 0.0  ;;  %v1528_v21 = vsel %vm1506_vm1, %v6017_v55, 0.0  ;;  %v1555_v27 = vrot.slane %v6017_v55, 1  ;;  %4314 = vmatpush3.bf16.msra.mxu1 %v4711_v16 }
 0x1dc   : > { %v1657_v50 = vrot.slane %v6017_v55, 2  ;;  %v1757_v46 = vrot.slane %v6017_v55, 3  ;;  %v1857_v43 = vrot.slane %v6017_v55, 4  ;;  %v1795_v13 = vsel %vm5600_vm0, %v1773_v47, 0.0  ;;  %4339 = vmatprep.subr.bf16.mxu1 %v6072_v58 }
 0x1dd   : > { %v1820_v54 = vadd.f32 %v1796_v20, %v1720_v62  ;;  %v7069_v51 = vrot.slane %v5441_v11, 4  ;;  %v1562_v42 = vsel %vm1560_vm4, %v1555_v27, %v1556_v44  ;;  %v1819_v6 = vadd.f32 %v1795_v13, %v1719_v0 }
 0x1de   : > { %v7071_v62 = vrot.slane %v5408_v38, 4  ;;  %v1606_v47 = vsel %vm5312_vm5, %v1562_v42, 0.0  ;;  %v7072_v38 = vrot.slane %v5570_v14, 1  ;;  %v7073_v20 = vrot.slane %v5477_v3, 1 }
 0x1df   : > { %v1872_v25 = vsel %vm1860_vm14, %v7069_v51, %v7068_v24  ;;  %v7070_v45 = vmov %v7069_v51  ;;  %v6084_v24 = vadd.f32 %v1606_v47, %v1528_v21  ;;  %v7075_v42 = vrot.slane %v5570_v14, 2 }
 0x1e0   : > { %v1873_v5 = vsel %vm1860_vm14, %v7071_v62, %v7070_v45  ;;  %v1896_v8 = vsel %vm5637_vm2, %v1872_v25, 0.0  ;;  %v1571_v13 = vsel %vm1560_vm4, %v7073_v20, %v7072_v38  ;;  %v7074_v45 = vrot.slane %v5474_v23, 2 }
 0x1e1   : > { %v1895_v11 = vsel %vm5637_vm2, %v1873_v5, 0.0  ;;  %v1920_v0 = vadd.f32 %v1896_v8, %v1820_v54  ;;  %v1597_v25 = vsel %vm5312_vm5, %v1571_v13, 0.0  ;;  %v7076_v5 = vmov %v7075_v42 }
 0x1e2   : > { %v1919_v51 = vadd.f32 %v1895_v11, %v1819_v6  ;;  %v1670_v54 = vsel %vm1660_vm8, %v7075_v42, %v7074_v45  ;;  %v1621_v62 = vadd.f32 %v1597_v25, %v5509_v56  ;;  %v7077_v8 = vrot.slane %v5477_v3, 2 }
 0x1e3   : > { %v1698_v6 = vsel %vm5540_vm15, %v1670_v54, 0.0  ;;  %v7078_v47 = vrot.slane %v5474_v23, 3  ;;  %v7079_v11 = vrot.slane %v5570_v14, 3  ;;  %v7081_v45 = vrot.slane %v5477_v3, 3 }
 0x1e4   : > { %v1671_v21 = vsel %vm1660_vm8, %v7077_v8, %v7076_v5  ;;  %v6109_v20 = vpack.c.bf16 %v1920_v0, %v1919_v51  ;;  %v1722_v13 = vadd.f32 %v1698_v6, %v5641_v2  ;;  %v7082_v51 = vrot.slane %v5474_v23, 4 }
 0x1e5   : > { %v1770_v38 = vsel %vm1760_vm11, %v7079_v11, %v7078_v47  ;;  %v1697_v56 = vsel %vm5540_vm15, %v1671_v21, 0.0  ;;  %v7080_v25 = vmov %v7079_v11  ;;  %v7083_v2 = vrot.slane %v5570_v14, 4 }
 0x1e6   : > { %v1771_v42 = vsel %vm1760_vm11, %v7081_v45, %v7080_v25  ;;  %v1721_v54 = vadd.f32 %v1697_v56, %v1621_v62  ;;  %v1798_v0 = vsel %vm5600_vm0, %v1770_v38, 0.0  ;;  %4283 = vmatprep.mubr.bf16.mxu1 %v6109_v20  ;;  %v7085_v62 = vrot.slane %v5477_v3, 4 }
 0x1e7   : > { %v1797_v16 = vsel %vm5600_vm0, %v1771_v42, 0.0  ;;  %v1870_v5 = vsel %vm1860_vm14, %v7083_v2, %v7082_v51  ;;  %v1822_v8 = vadd.f32 %v1798_v0, %v1722_v13  ;;  %v7084_v21 = vmov %v7083_v2 }
 0x1e8   : > { %v1871_v6 = vsel %vm1860_vm14, %v7085_v62, %v7084_v21  ;;  %v1898_v47 = vsel %vm5637_vm2, %v1870_v5, 0.0  ;;  %v7086_v11 = vrot.slane %v5519_v39, 1  ;;  %v1821_v56 = vadd.f32 %v1797_v16, %v1721_v54  ;;  %v7090_v5 = vld [vmem:[#allocation13_spill] sm:$0xff] }
 0x1e9   : > { %v1897_v13 = vsel %vm5637_vm2, %v1871_v6, 0.0  ;;  %v7088_v3 = vrot.slane %v5474_v23, 1  ;;  %v1922_v42 = vadd.f32 %v1898_v47, %v1822_v8  ;;  %v7089_v54 = vrot.slane %v5519_v39, 2 }
 0x1ea   : > { %v1568_v38 = vsel %vm1560_vm4, %v7086_v11, %v1550_v40  ;;  %v7087_v14 = vmov %v7086_v11  ;;  %v1921_v2 = vadd.f32 %v1897_v13, %v1821_v56  ;;  %v7092_v6 = vrot.slane %v5474_v23, 2 }
 0x1eb   : > { %v1569_v25 = vsel %vm1560_vm4, %v7088_v3, %v7087_v14  ;;  %v1600_v45 = vsel %vm5312_vm5, %v1568_v38, 0.0  ;;  %v1668_v16 = vsel %vm1660_vm8, %v7089_v54, %v1652_v31  ;;  %v7091_v62 = vmov %v7089_v54 }
 0x1ec   : > { %v1599_v0 = vsel %vm5312_vm5, %v1569_v25, 0.0  ;;  %v1624_v51 = vadd.f32 %v1600_v45, %v5561_v52  ;;  %v1669_v8 = vsel %vm1660_vm8, %v7092_v6, %v7091_v62  ;;  %v1700_v52 = vsel %vm5540_vm15, %v1668_v16, 0.0 }
 0x1ed   : > { %v1623_v21 = vadd.f32 %v1599_v0, %v7090_v5  ;;  %v1699_v47 = vsel %vm5540_vm15, %v1669_v8, 0.0  ;;  %v7093_v38 = vrot.slane %v5519_v39, 3  ;;  %v7095_v14 = vrot.slane %v5474_v23, 3 }
 0x1ee   : > { %v1724_v11 = vadd.f32 %v1700_v52, %v1624_v51  ;;  %v6188_v25 = vpack.c.bf16 %v1922_v42, %v1921_v2  ;;  %v7096_v16 = vrot.slane %v5519_v39, 4  ;;  %v7098_v42 = vrot.slane %v5474_v23, 4 }
 0x1ef   : > { %v1768_v56 = vsel %vm1760_vm11, %v7093_v38, %v1752_v33  ;;  %v7094_v13 = vmov %v7093_v38  ;;  %v1723_v45 = vadd.f32 %v1699_v47, %v1623_v21  ;;  %v1567_v21 = vsel %vm1560_vm4, %v1550_v40, %v1551_v49 }
 0x1f0   : > { %v1769_v3 = vsel %vm1760_vm11, %v7095_v14, %v7094_v13  ;;  %v1800_v51 = vsel %vm5600_vm0, %v1768_v56, 0.0  ;;  %v1868_v5 = vsel %vm1860_vm14, %v7096_v16, %v1852_v28  ;;  %v7097_v62 = vmov %v7096_v16  ;;  %4284 = vmatmul.mubr.bf16.gmra.mrb[8].mxu1 %v6188_v25 }
 0x1f1   : > { %v1799_v0 = vsel %vm5600_vm0, %v1769_v3, 0.0  ;;  %v1824_v54 = vadd.f32 %v1800_v51, %v1724_v11  ;;  %v1869_v2 = vsel %vm1860_vm14, %v7098_v42, %v7097_v62  ;;  %v1900_v39 = vsel %vm5637_vm2, %v1868_v5, 0.0 }
 0x1f2   : > { %v1823_v6 = vadd.f32 %v1799_v0, %v1723_v45  ;;  %v1899_v8 = vsel %vm5637_vm2, %v1869_v2, 0.0  ;;  %v1601_v23 = vsel %vm5312_vm5, %v1567_v21, 0.0  ;;  %v7099_v11 = vrot.slane %v5594_v63, 2 }
 0x1f3   : > { %v1924_v52 = vadd.f32 %v1900_v39, %v1824_v54  ;;  %v1625_v47 = vadd.f32 %v1601_v23, %v5737_v37  ;;  %v1667_v49 = vsel %vm1660_vm8, %v1652_v31, %v1653_v19  ;;  %v7100_v13 = vrot.slane %v5594_v63, 3 }
 0x1f4   : > { %v1666_v40 = vsel %vm1660_vm8, %v1653_v19, %v7099_v11  ;;  %v1923_v38 = vadd.f32 %v1899_v8, %v1823_v6  ;;  %v1701_v56 = vsel %vm5540_vm15, %v1667_v49, 0.0  ;;  %v1767_v31 = vsel %vm1760_vm11, %v1752_v33, %v1753_v17 }
 0x1f5   : > { %v1702_v37 = vsel %vm5540_vm15, %v1666_v40, 0.0  ;;  %v1766_v14 = vsel %vm1760_vm11, %v1753_v17, %v7100_v13  ;;  %v1725_v3 = vadd.f32 %v1701_v56, %v1625_v47  ;;  %v1801_v51 = vsel %vm5600_vm0, %v1767_v31, 0.0 }
 0x1f6   : > { %v1726_v45 = vadd.f32 %v1702_v37, %v5867_v36  ;;  %v1802_v19 = vsel %vm5600_vm0, %v1766_v14, 0.0  ;;  %v6251_v0 = vpack.c.bf16 %v1924_v52, %v1923_v38  ;;  %v7101_v54 = vrot.slane %v5594_v63, 4  ;;  %v7110_v38 = vld [vmem:[#allocation14_spill] sm:$0xff] }
 0x1f7   : > { %v1867_v33 = vsel %vm1860_vm14, %v1852_v28, %v1853_v35  ;;  %v1825_v17 = vadd.f32 %v1801_v51, %v1725_v3  ;;  %v7102_v42 = vrot.slane %v5920_v32, 1  ;;  %v7103_v2 = vrot.slane %v5724_v29, 1 }
 0x1f8   : > { %v1866_v36 = vsel %vm1860_vm14, %v1853_v35, %v7101_v54  ;;  %v1826_v16 = vadd.f32 %v1802_v19, %v1726_v45  ;;  %v1901_v5 = vsel %vm5637_vm2, %v1867_v33, 0.0  ;;  %4287 = vmatprep.mubr.bf16.mxu1 %v6251_v0  ;;  %v7105_v28 = vrot.slane %v5594_v63, 1 }
 0x1f9   : > { %v1902_v62 = vsel %vm5637_vm2, %v1866_v36, 0.0  ;;  %v1564_v26 = vsel %vm1560_vm4, %v7103_v2, %v7102_v42  ;;  %v7104_v15 = vmov %v7103_v2  ;;  %v7106_v21 = vrot.slane %v5920_v32, 2 }
 0x1fa   : > { %v1565_v35 = vsel %vm1560_vm4, %v7105_v28, %v7104_v15  ;;  %v7107_v6 = vrot.slane %v5724_v29, 2  ;;  %v7109_v23 = vmov %v7099_v11  ;;  %v1925_v47 = vadd.f32 %v1901_v5, %v1825_v17 }
 0x1fb   : > { %v1926_v11 = vadd.f32 %v1902_v62, %v1826_v16  ;;  %v1603_v40 = vsel %vm5312_vm5, %v1565_v35, 0.0  ;;  %v1604_v49 = vsel %vm5312_vm5, %v1564_v26, 0.0  ;;  %v7111_v45 = vrot.slane %v5920_v32, 3 }
 0x1fc   : > { %v1664_v8 = vsel %vm1660_vm8, %v7107_v6, %v7106_v21  ;;  %v7108_v39 = vmov %v7107_v6  ;;  %v1627_v56 = vadd.f32 %v1603_v40, %v7110_v38  ;;  %v1628_v37 = vadd.f32 %v1604_v49, %v5746_v34 }
 0x1fd   : > { %v1665_v52 = vsel %vm1660_vm8, %v7109_v23, %v7108_v39  ;;  %v1704_v14 = vsel %vm5540_vm15, %v1664_v8, 0.0  ;;  %v6306_v3 = vpack.c.bf16 %v1926_v11, %v1925_v47  ;;  %v7112_v31 = vrot.slane %v5724_v29, 3 }
 0x1fe   : > { %v1703_v13 = vsel %vm5540_vm15, %v1665_v52, 0.0  ;;  %v7114_v54 = vrot.slane %v5594_v63, 3  ;;  %v7115_v36 = vrot.slane %v5920_v32, 4  ;;  %v7116_v33 = vrot.slane %v5724_v29, 4 }
 0x1ff   : > { %v1764_v19 = vsel %vm1760_vm11, %v7112_v31, %v7111_v45  ;;  %v7113_v51 = vmov %v7112_v31  ;;  %v1727_v16 = vadd.f32 %v1703_v13, %v1627_v56  ;;  %v1728_v5 = vadd.f32 %v1704_v14, %v1628_v37  ;;  %4288 = vmatmul.mubr.bf16.gmra.mrb[12].mxu1 %v6306_v3 }
 0x200   : > { %v1765_v34 = vsel %vm1760_vm11, %v7114_v54, %v7113_v51  ;;  %v1864_v17 = vsel %vm1860_vm14, %v7116_v33, %v7115_v36  ;;  %v1804_v42 = vsel %vm5600_vm0, %v1764_v19, 0.0  ;;  %v7117_v2 = vmov %v7116_v33 }
 0x201   : > { %v1803_v62 = vsel %vm5600_vm0, %v1765_v34, 0.0  ;;  %v7118_v26 = vrot.slane %v5594_v63, 4  ;;  %v1904_v28 = vsel %vm5637_vm2, %v1864_v17, 0.0  ;;  %v7119_v35 = vrot.slane %v5920_v32, 1 }
 0x202   : > { %v7120_v6 = vrot.slane %v5835_v41, 2  ;;  %v1827_v29 = vadd.f32 %v1803_v62, %v1727_v16  ;;  %v1828_v8 = vadd.f32 %v1804_v42, %v1728_v5  ;;  %v7122_v40 = vrot.slane %v5835_v41, 3 }
 0x203   : > { %v1865_v15 = vsel %vm1860_vm14, %v7118_v26, %v7117_v2  ;;  %v1563_v21 = vsel %vm1560_vm4, %v7119_v35, %v1555_v27  ;;  %v7121_v27 = vrot.slane %v5920_v32, 2  ;;  %v7124_v31 = vrot.slane %v5835_v41, 4 }
 0x204   : > { %v1662_v63 = vsel %vm1660_vm8, %v1657_v50, %v7120_v6  ;;  %v1903_v39 = vsel %vm5637_vm2, %v1865_v15, 0.0  ;;  %v1605_v23 = vsel %vm5312_vm5, %v1563_v21, 0.0  ;;  %v1762_v49 = vsel %vm1760_vm11, %v1757_v46, %v7122_v40 }
 0x205   : > { %v1629_v52 = vadd.f32 %v1605_v23, %v5944_v59  ;;  %v1663_v47 = vsel %vm1660_vm8, %v7121_v27, %v1657_v50  ;;  %v1706_v11 = vsel %vm5540_vm15, %v1662_v63, 0.0  ;;  %v1927_v38 = vadd.f32 %v1903_v39, %v1827_v29 }
 0x206   : > { %v1928_v56 = vadd.f32 %v1904_v28, %v1828_v8  ;;  %v1705_v59 = vsel %vm5540_vm15, %v1663_v47, 0.0  ;;  %v1730_v37 = vadd.f32 %v1706_v11, %v6084_v24  ;;  %v7123_v50 = vmov %v7111_v45 }
 0x207   : > { %v1729_v13 = vadd.f32 %v1705_v59, %v1629_v52  ;;  %v1763_v14 = vsel %vm1760_vm11, %v7123_v50, %v1757_v46  ;;  %v1806_v45 = vsel %vm5600_vm0, %v1762_v49, 0.0  ;;  %v1862_v19 = vsel %vm1860_vm14, %v1857_v43, %v7124_v31 }
 0x208   : > { %v6387_v51 = vpack.c.bf16 %v1928_v56, %v1927_v38  ;;  %v1805_v24 = vsel %vm5600_vm0, %v1763_v14, 0.0  ;;  %v1830_v54 = vadd.f32 %v1806_v45, %v1730_v37  ;;  %v7125_v46 = vmov %v7115_v36 }
 0x209   : > { %v1863_v34 = vsel %vm1860_vm14, %v7125_v46, %v1857_v43  ;;  %v1829_v36 = vadd.f32 %v1805_v24, %v1729_v13  ;;  %v1906_v17 = vsel %vm5637_vm2, %v1862_v19, 0.0  ;;  %v7126_v16 = vrot.slane %v5954_v18, 1  ;;  %v7139_v13 = vld [vmem:[#allocation11_spill] sm:$0xff]  ;;  %v7142_v24 = vld [vmem:[#allocation8_spill] sm:$0xff] }
 0x20a   : > { %v1905_v33 = vsel %vm5637_vm2, %v1863_v34, 0.0  ;;  %4291 = vmatprep.mubr.bf16.mxu1 %v6387_v51  ;;  %v1930_v32 = vadd.f32 %v1906_v17, %v1830_v54  ;;  %v7127_v43 = vrot.slane %v5954_v18, 2  ;;  %v7128_v62 = vmov %v7120_v6 }
 0x20b   : > { %v1561_v5 = vsel %vm1560_vm4, %v1556_v44, %v7126_v16  ;;  %v7129_v2 = vrot.slane %v7053_v61, 2  ;;  %v1929_v15 = vadd.f32 %v1905_v33, %v1829_v36  ;;  %v7131_v63 = vrot.slane %v5954_v18, 3  ;;  %v7145_v33 = vld [vmem:[#allocation10_spill] sm:$0xff] }
 0x20c   : > { %v1607_v55 = vsel %vm5312_vm5, %v1561_v5, 0.0  ;;  %v1661_v42 = vsel %vm1660_vm8, %v7128_v62, %v7127_v43  ;;  %v7130_v26 = vmov %v7127_v43  ;;  %v7132_v29 = vmov %v7122_v40  ;;  %v7148_v62 = vld [vmem:[#allocation12_spill] sm:$0xff] }
 0x20d   : > { %v1684_v44 = vsel %vm1660_vm8, %v7130_v26, %v7129_v2  ;;  %v1631_v28 = vadd.f32 %v1607_v55, %v5860_v53  ;;  %v1707_v35 = vsel %vm5540_vm15, %v1661_v42, 0.0  ;;  %v1761_v8 = vsel %vm1760_vm11, %v7132_v29, %v7131_v63 }
 0x20e   : > { %v1708_v21 = vsel %vm5540_vm15, %v1684_v44, 0.0  ;;  %v7133_v39 = vrot.slane %v7053_v61, 3  ;;  %v7134_v23 = vmov %v7131_v63  ;;  %v7135_v52 = vrot.slane %v5954_v18, 4 }
 0x20f   : > { %v1732_v6 = vadd.f32 %v1708_v21, %v6005_v7  ;;  %v7136_v27 = vmov %v7124_v31  ;;  %v6446_v47 = vpack.c.bf16 %v1930_v32, %v1929_v15  ;;  %v1731_v11 = vadd.f32 %v1707_v35, %v1631_v28 }
 0x210   : > { %v1784_v53 = vsel %vm1760_vm11, %v7134_v23, %v7133_v39  ;;  %v1861_v7 = vsel %vm1860_vm14, %v7136_v27, %v7135_v52  ;;  %v1807_v40 = vsel %vm5600_vm0, %v1761_v8, 0.0  ;;  %v7137_v56 = vrot.slane %v7053_v61, 4 }
 0x211   : > { %v1808_v49 = vsel %vm5600_vm0, %v1784_v53, 0.0  ;;  %v7138_v59 = vmov %v7135_v52  ;;  %v1907_v37 = vsel %vm5637_vm2, %v1861_v7, 0.0  ;;  %v7140_v50 = vrot.slane %v7139_v13, 1  ;;  %4292 = vmatmul.mubr.bf16.gmra.mrb[16].mxu1 %v6446_v47 }
 0x212   : > { %v1832_v38 = vadd.f32 %v1808_v49, %v1732_v6  ;;  %v1884_v41 = vsel %vm1860_vm14, %v7138_v59, %v7137_v56  ;;  %v7141_v14 = vrot.slane %v7053_v61, 1  ;;  %v1831_v31 = vadd.f32 %v1807_v40, %v1731_v11  ;;  %v4713_v61 = vld [vmem:[%s6920_s3 + $0x88] sm:$0xff]  }
 0x213   : > { %v1908_v19 = vsel %vm5637_vm2, %v1884_v41, 0.0  ;;  %v7143_v54 = vrot.slane %v7142_v24, 2  ;;  %v7144_v46 = vrot.slane %v7139_v13, 2  ;;  %v7147_v5 = vmov %v7129_v2  ;;  %v4717_v59 = vld [vmem:[%s6920_s3 + $0xa8] sm:$0xff]   ;;  %v4718_v41 = vld [vmem:[%s6920_s3 + $0xb0] sm:$0xff]  }
 0x214   : > { %v1583_v45 = vsel %vm1560_vm4, %v7141_v14, %v7140_v50  ;;  %v1932_v36 = vadd.f32 %v1908_v19, %v1832_v38  ;;  %v1931_v55 = vadd.f32 %v1907_v37, %v1831_v31  ;;  %v7149_v2 = vrot.slane %v7142_v24, 3  ;;  %v4719_v37 = vld [vmem:[%s6920_s3 + $0xb8] sm:$0xff]   ;;  %v4721_v50 = vld [vmem:[%s6920_s3 + $0xc8] sm:$0xff]   ;;  %v4722_v14 = vld [vmem:[%s6920_s3 + $0xd0] sm:$0xff]  }
 0x215   : > { %v1585_v18 = vsel %vm5312_vm5, %v1583_v45, 0.0  ;;  %v1682_v34 = vsel %vm1660_vm8, %v7144_v46, %v7143_v54  ;;  %v7146_v16 = vmov %v7144_v46  ;;  %v7150_v26 = vrot.slane %v7139_v13, 3  ;;  %v4723_v45 = vld [vmem:[%s6920_s3 + $0xd8] sm:$0xff]   ;;  %v4724_v31 = vld [vmem:[%s6920_s3 + $0xe0] sm:$0xff]   ;;  %v4725_v19 = vld [vmem:[%s6920_s3 + $0xe8] sm:$0xff]  }
 0x216   : > { %v1609_v17 = vadd.f32 %v1585_v18, %v7145_v33  ;;  %v1683_v32 = vsel %vm1660_vm8, %v7147_v5, %v7146_v16  ;;  %v1686_v4 = vsel %vm5540_vm15, %v1682_v34, 0.0  ;;  %v7152_v35 = vmov %v7133_v39  ;;  %v4726_v18 = vld [vmem:[%s6920_s3 + $0xf0] sm:$0xff]   ;;  %v4728_v54 = vld [vmem:[%s6920_s3 + $0x100] sm:$0xff]   ;;  %v4729_v46 = vld [vmem:[%s6920_s3 + $0x108] sm:$0xff]  }
 0x217   : > { %v1685_v43 = vsel %vm5540_vm15, %v1683_v32, 0.0  ;;  %v1710_v42 = vadd.f32 %v1686_v4, %v7148_v62  ;;  %v1782_v44 = vsel %vm1760_vm11, %v7150_v26, %v7149_v2  ;;  %v7151_v28 = vmov %v7150_v26  ;;  %v4730_v34 = vld [vmem:[%s6920_s3 + $0x110] sm:$0xff]   ;;  %v4732_v33 = vld [vmem:[%s6920_s3 + $0x120] sm:$0xff]   ;;  %v4735_v5 = vld [vmem:[%s6920_s3 + $0x138] sm:$0xff]  }
 0x218   : > { %v1709_v15 = vadd.f32 %v1685_v43, %v1609_v17  ;;  %v1783_v21 = vsel %vm1760_vm11, %v7152_v35, %v7151_v28  ;;  %v1786_v30 = vsel %vm5600_vm0, %v1782_v44, 0.0  ;;  %v7153_v6 = vrot.slane %v7142_v24, 4  ;;  %v4727_v24 = vld [vmem:[%s6920_s3 + $0xf8] sm:$0xff]   ;;  %v4733_v17 = vld [vmem:[%s6920_s3 + $0x128] sm:$0xff]   ;;  %v4734_v16 = vld [vmem:[%s6920_s3 + $0x130] sm:$0xff]  }
 0x219   : > { %v7154_v63 = vrot.slane %v7139_v13, 4  ;;  %v6509_v8 = vpack.c.bf16 %v1932_v36, %v1931_v55  ;;  %v1785_v39 = vsel %vm5600_vm0, %v1783_v21, 0.0  ;;  %v1810_v23 = vadd.f32 %v1786_v30, %v1710_v42  ;;  %v4720_v13 = vld [vmem:[%s6920_s3 + $0xc0] sm:$0xff]   ;;  %v4731_v36 = vld [vmem:[%s6920_s3 + $0x118] sm:$0xff]  }
 0x21a   : > { %v7156_v52 = vmov %v7137_v56  ;;  %v1809_v7 = vadd.f32 %v1785_v39, %v1709_v15  ;;  %v4715_v56 = vld [vmem:[%s6920_s3 + $0x98] sm:$0xff]   ;;  %vm3160_vm1 = vcmask 523264  }
 0x21b   : > { %v1882_v29 = vsel %vm1860_vm14, %v7154_v63, %v7153_v6  ;;  %v7155_v53 = vmov %v7154_v63  ;;  %4295 = vmatprep.mubr.bf16.mxu1 %v6509_v8 }
 0x21c   : > { %v1883_v27 = vsel %vm1860_vm14, %v7156_v52, %v7155_v53  ;;  %v1886_v11 = vsel %vm5637_vm2, %v1882_v29, 0.0 }
 0x21d   : > { %v1885_v40 = vsel %vm5637_vm2, %v1883_v27, 0.0  ;;  %v1910_v49 = vadd.f32 %v1886_v11, %v1810_v23 }
 0x21e   : > { %v1909_v9 = vadd.f32 %v1885_v40, %v1809_v7 }
 0x220   : > { %v6524_v38 = vpack.c.bf16 %v1910_v49, %v1909_v9 }
 0x222   : > { %4296 = vmatmul.mubr.bf16.gmra.mrb[20].mxu1 %v6524_v38 }
 0x223   : > { %4315 = vmatprep.mubr.bf16.mxu1 %v6524_v38 }
 0x22a   : > { %4316 = vmatmul.mubr.bf16.vlgmr.msra.gmra.mrb[0].mxu1 %v5682_v12 }
 0x22b   : > { %4319 = vmatprep.mubr.bf16.mxu1 %v5766_v60  ;;  %4340 = vmatpush3.bf16.msra.mxu1 %v6072_v58  ;;  %v4716_v58 = vld [vmem:[%s6920_s3 + $0xa0] sm:$0xff]  }
 0x22c   : > { %4341 = vmatprep.subr.bf16.mxu1 %v4713_v61 }
 0x22f   : > { %4342 = vmatpush3.bf16.msra.mxu1 %v4713_v61 }
 0x230   : > { %4343 = vmatprep.subr.bf16.mxu1 %v4714_v22 }
 0x232   : > { %4320 = vmatmul.mubr.bf16.gmra.mrb[4].mxu1 %v5898_v48 }
 0x233   : > { %4323 = vmatprep.mubr.bf16.mxu1 %v5999_v57  ;;  %4344 = vmatpush3.bf16.msra.mxu1 %v4714_v22 }
 0x234   : > { %4345 = vmatprep.subr.bf16.mxu1 %v4715_v56 }
 0x237   : > { %4346 = vmatpush3.bf16.msra.mxu1 %v4715_v56 }
 0x238   : > { %4347 = vmatprep.subr.bf16.mxu1 %v4716_v58 }
 0x23a   : > { %4324 = vmatmul.mubr.bf16.gmra.mrb[8].mxu1 %v6109_v20 }
 0x23b   : > { %4327 = vmatprep.mubr.bf16.mxu1 %v6188_v25  ;;  %4348 = vmatpush3.bf16.msra.mxu1 %v4716_v58 }
 0x23c   : > { %4349 = vmatprep.subr.bf16.mxu1 %v4717_v59 }
 0x23f   : > { %4350 = vmatpush3.bf16.msra.mxu1 %v4717_v59 }
 0x240   : > { %4351 = vmatprep.subr.bf16.mxu1 %v4718_v41 }
 0x242   : > { %4328 = vmatmul.mubr.bf16.gmra.mrb[12].mxu1 %v6251_v0 }
 0x243   : > { %4331 = vmatprep.mubr.bf16.mxu1 %v6306_v3  ;;  %4352 = vmatpush3.bf16.msra.mxu1 %v4718_v41 }
 0x244   : > { %4353 = vmatprep.subr.bf16.mxu1 %v4719_v37 }
 0x247   : > { %4354 = vmatpush3.bf16.msra.mxu1 %v4719_v37 }
 0x248   : > { %4379 = vmatprep.subr.bf16.mxu1 %v4720_v13 }
 0x24a   : > { %4332 = vmatmul.mubr.bf16.gmra.mrb[16].mxu1 %v6387_v51 }
 0x24b   : > { %4335 = vmatprep.mubr.bf16.mxu1 %v6446_v47 }
 0x252   : > { %4336 = vmatmul.mubr.bf16.gmra.mrb[20].mxu1 %v6509_v8 }
 0x253   : > { %4355 = vmatprep.mubr.bf16.mxu1 %v5766_v60 }
 0x25a   : > { %4356 = vmatmul.mubr.bf16.vlgmr.msra.gmra.mrb[0].mxu1 %v5898_v48 }
 0x25b   : > { %4359 = vmatprep.mubr.bf16.mxu1 %v5999_v57  ;;  %4380 = vmatpush3.bf16.msra.mxu1 %v4720_v13 }
 0x25c   : > { %4381 = vmatprep.subr.bf16.mxu1 %v4721_v50 }
 0x25f   : > { %4382 = vmatpush3.bf16.msra.mxu1 %v4721_v50 }
 0x260   : > { %4383 = vmatprep.subr.bf16.mxu1 %v4722_v14 }
 0x262   : > { %4360 = vmatmul.mubr.bf16.gmra.mrb[4].mxu1 %v6109_v20 }
 0x263   : > { %4363 = vmatprep.mubr.bf16.mxu1 %v6188_v25  ;;  %4384 = vmatpush3.bf16.msra.mxu1 %v4722_v14 }
 0x264   : > { %4385 = vmatprep.subr.bf16.mxu1 %v4723_v45 }
 0x267   : > { %4386 = vmatpush3.bf16.msra.mxu1 %v4723_v45 }
 0x268   : > { %4387 = vmatprep.subr.bf16.mxu1 %v4724_v31 }
 0x26a   : > { %4364 = vmatmul.mubr.bf16.gmra.mrb[8].mxu1 %v6251_v0 }
 0x26b   : > { %4367 = vmatprep.mubr.bf16.mxu1 %v6306_v3  ;;  %4388 = vmatpush3.bf16.msra.mxu1 %v4724_v31 }
 0x26c   : > { %4389 = vmatprep.subr.bf16.mxu1 %v4725_v19 }
 0x26f   : > { %4390 = vmatpush3.bf16.msra.mxu1 %v4725_v19 }
 0x270   : > { %4391 = vmatprep.subr.bf16.mxu1 %v4726_v18 }
 0x272   : > { %4368 = vmatmul.mubr.bf16.gmra.mrb[12].mxu1 %v6387_v51 }
 0x273   : > { %4371 = vmatprep.mubr.bf16.mxu1 %v6446_v47  ;;  %4392 = vmatpush3.bf16.msra.mxu1 %v4726_v18 }
 0x274   : > { %4393 = vmatprep.subr.bf16.mxu1 %v4727_v24 }
 0x277   : > { %4394 = vmatpush3.bf16.msra.mxu1 %v4727_v24 }
 0x278   : > { %4419 = vmatprep.subr.bf16.mxu1 %v4728_v54 }
 0x27a   : > { %4372 = vmatmul.mubr.bf16.gmra.mrb[16].mxu1 %v6509_v8 }
 0x27b   : > { %4375 = vmatprep.mubr.bf16.mxu1 %v6524_v38 }
 0x282   : > { %4376 = vmatmul.mubr.bf16.gmra.mrb[20].mxu1 %v5682_v12 }
 0x283   : > { %4395 = vmatprep.mubr.bf16.mxu1 %v5898_v48 }
 0x28a   : > { %4396 = vmatmul.mubr.bf16.vlgmr.msra.gmra.mrb[0].mxu1 %v5999_v57 }
 0x28b   : > { %4399 = vmatprep.mubr.bf16.mxu1 %v6109_v20  ;;  %4420 = vmatpush3.bf16.msra.mxu1 %v4728_v54 }
 0x28c   : > { %4421 = vmatprep.subr.bf16.mxu1 %v4729_v46 }
 0x28f   : > { %4422 = vmatpush3.bf16.msra.mxu1 %v4729_v46 }
 0x290   : > { %4423 = vmatprep.subr.bf16.mxu1 %v4730_v34 }
 0x292   : > { %4400 = vmatmul.mubr.bf16.gmra.mrb[4].mxu1 %v6188_v25 }
 0x293   : > { %4403 = vmatprep.mubr.bf16.mxu1 %v6251_v0  ;;  %4424 = vmatpush3.bf16.msra.mxu1 %v4730_v34 }
 0x294   : > { %4425 = vmatprep.subr.bf16.mxu1 %v4731_v36 }
 0x297   : > { %4426 = vmatpush3.bf16.msra.mxu1 %v4731_v36 }
 0x298   : > { %4427 = vmatprep.subr.bf16.mxu1 %v4732_v33 }
 0x29a   : > { %4404 = vmatmul.mubr.bf16.gmra.mrb[8].mxu1 %v6306_v3 }
 0x29b   : > { %4407 = vmatprep.mubr.bf16.mxu1 %v6387_v51  ;;  %4428 = vmatpush3.bf16.msra.mxu1 %v4732_v33 }
 0x29c   : > { %4429 = vmatprep.subr.bf16.mxu1 %v4733_v17 }
 0x29f   : > { %4430 = vmatpush3.bf16.msra.mxu1 %v4733_v17 }
 0x2a0   : > { %4431 = vmatprep.subr.bf16.mxu1 %v4734_v16 }
 0x2a2   : > { %4408 = vmatmul.mubr.bf16.gmra.mrb[12].mxu1 %v6446_v47 }
 0x2a3   : > { %4411 = vmatprep.mubr.bf16.mxu1 %v6509_v8  ;;  %4432 = vmatpush3.bf16.msra.mxu1 %v4734_v16 }
 0x2a4   : > { %4433 = vmatprep.subr.bf16.mxu1 %v4735_v5 }
 0x2a7   : > { %4434 = vmatpush3.bf16.msra.mxu1 %v4735_v5 }
 0x2aa   : > { %4412 = vmatmul.mubr.bf16.gmra.mrb[16].mxu1 %v6524_v38 }
 0x2ab   : > { %4415 = vmatprep.mubr.bf16.mxu1 %v5682_v12 }
 0x2b2   : > { %4416 = vmatmul.mubr.bf16.gmra.mrb[20].mxu1 %v5766_v60 }
 0x2b3   : > { %4435 = vmatprep.mubr.bf16.mxu1 %v5999_v57  ;;  %v4780_v57 = vmov 0  }
 0x2b4   : > { %3164 = vmatprep.subr.bf16.mxu0 %v4780_v57 }
 0x2ba   : > { %4436 = vmatmul.mubr.bf16.vlgmr.msra.gmra.mrb[0].mxu1 %v6109_v20  ;;  %v4738_v20 = vld [vmem:[%s6922_s5 + $0x4] ss:$8 sps:$4 sm:$0xff]  }
 0x2bb   : > { %4439 = vmatprep.mubr.bf16.mxu1 %v6188_v25  ;;  %3922 = vmatprep.mubr.msk.bf16.mxu0 %vm3160_vm1, %v4738_v20  ;;  %v4781_v25 = vmov 0.0  }
 0x2bc   : > { %4499 = vmatprep.subr.bf16.mxu1 %v4781_v25 }
 0x2c2   : > { %4440 = vmatmul.mubr.bf16.gmra.mrb[4].mxu1 %v6251_v0 }
 0x2c3   : > { %4443 = vmatprep.mubr.bf16.mxu1 %v6306_v3 }
 0x2ca   : > { %4444 = vmatmul.mubr.bf16.gmra.mrb[8].mxu1 %v6387_v51 }
 0x2cb   : > { %4447 = vmatprep.mubr.bf16.mxu1 %v6446_v47 }
 0x2d2   : > { %4448 = vmatmul.mubr.bf16.gmra.mrb[12].mxu1 %v6509_v8 }
 0x2d3   : > { %4451 = vmatprep.mubr.bf16.mxu1 %v6524_v38 }
 0x2da   : > { %4452 = vmatmul.mubr.bf16.gmra.mrb[16].mxu1 %v5682_v12  ;;  %v6653_v12 = vld [vmem:[%s6921_s4] ss:$0 sm:$0xff] }
 0x2db   : > { %4455 = vmatprep.mubr.bf16.mxu1 %v5766_v60 }
 0x2e2   : > { %4456 = vmatmul.mubr.bf16.gmra.mrb[20].mxu1 %v5898_v48 }
 0x2e3   : > { %4515 = vmatprep.mubr.msk.bf16.mxu1 %vm4782_vm3, %v4781_v25 }
 0x38d   : > { %v4437_v60 = vpop.f32.mrb[0].mxu1 }
 0x38e   : > { %v2995_v48 = vadd.f32 %v4437_v60, %v6653_v12  ;;  %v2867_v0 = vpop.f32.mrb[1].mxu1 }
 0x38f   : > { %v2993_v3 = vadd.f32 %v6653_v12, %v2867_v0  ;;  %v4438_v51 = vpop.f32.mrb[2].mxu1 }
 0x390   : > { %v3019_v47 = vmax.f32 %v2995_v48, 0.0  ;;  %v2996_v32 = vadd.f32 %v4438_v51, %v6653_v12  ;;  %v2870_v4 = vpop.f32.mrb[3].mxu1 }
 0x391   : > { %v3017_v55 = vmax.f32 %v2993_v3, 0.0  ;;  %v2994_v43 = vadd.f32 %v6653_v12, %v2870_v4 }
 0x392   : > { %v3020_v62 = vmax.f32 %v2996_v32, 0.0  ;;  %v3043_v2 = vrot.slane %v3019_v47, 1 }
 0x393   : > { %v3018_v42 = vmax.f32 %v2994_v43, 0.0  ;;  %v6659_v44 = vrot.slane %v3017_v55, 1 }
 0x394   : > { %v3044_v26 = vrot.slane %v3020_v62, 1 }
 0x395   : > { %v3042_v15 = vrot.slane %v3018_v42, 1  ;;  %v4441_v28 = vpop.f32.mrb[4].mxu1 }
 0x396   : > { %v3085_v35 = vsel %vm1560_vm4, %v3043_v2, %v3044_v26  ;;  %v2999_v21 = vadd.f32 %v4441_v28, %v6653_v12  ;;  %v2883_v30 = vpop.f32.mrb[5].mxu1 }
 0x397   : > { %v3091_v6 = vmax.f32 %v3019_v47, %v3085_v35  ;;  %v3086_v63 = vsel %vm1560_vm4, %v3042_v15, %v3043_v2  ;;  %v3087_v29 = vsel %vm1560_vm4, %v6659_v44, %v3042_v15  ;;  %v2997_v8 = vadd.f32 %v6653_v12, %v2883_v30  ;;  %v4442_v39 = vpop.f32.mrb[6].mxu1 }
 0x398   : > { %v6670_v23 = vmax.f32 %v3017_v55, %v3087_v29  ;;  %v6672_v53 = vmax.f32 %v3018_v42, %v3086_v63  ;;  %v3023_v52 = vmax.f32 %v2999_v21, 0.0  ;;  %v3000_v27 = vadd.f32 %v4442_v39, %v6653_v12  ;;  %v2886_v7 = vpop.f32.mrb[7].mxu1 }
 0x399   : > { %v3021_v11 = vmax.f32 %v2997_v8, 0.0  ;;  %v2998_v40 = vadd.f32 %v6653_v12, %v2886_v7 }
 0x39a   : > { %v3024_v49 = vmax.f32 %v3000_v27, 0.0  ;;  %v3113_v9 = vmax.f32 %v6670_v23, %v3091_v6  ;;  %v3047_v22 = vrot.slane %v3023_v52, 1 }
 0x39b   : > { %v3045_v38 = vrot.slane %v3021_v11, 1  ;;  %v3022_v61 = vmax.f32 %v2998_v40, 0.0 }
 0x39c   : > { %v3048_v56 = vrot.slane %v3024_v49, 1 }
 0x39d   : > { %v3084_v58 = vsel %vm1560_vm4, %v3044_v26, %v3045_v38  ;;  %v3046_v59 = vrot.slane %v3022_v61, 1  ;;  %v4445_v41 = vpop.f32.mrb[8].mxu1 }
 0x39e   : > { %v3081_v37 = vsel %vm1560_vm4, %v3047_v22, %v3048_v56  ;;  %v3092_v13 = vmax.f32 %v3020_v62, %v3084_v58  ;;  %v3003_v50 = vadd.f32 %v4445_v41, %v6653_v12  ;;  %v2899_v14 = vpop.f32.mrb[9].mxu1 }
 0x39f   : > { %v3095_v45 = vmax.f32 %v3023_v52, %v3081_v37  ;;  %v3082_v31 = vsel %vm1560_vm4, %v3046_v59, %v3047_v22  ;;  %v3083_v19 = vsel %vm1560_vm4, %v3045_v38, %v3046_v59  ;;  %v3001_v18 = vadd.f32 %v6653_v12, %v2899_v14  ;;  %v4446_v24 = vpop.f32.mrb[10].mxu1 }
 0x3a0   : > { %v3093_v54 = vmax.f32 %v3021_v11, %v3083_v19  ;;  %v3094_v46 = vmax.f32 %v3022_v61, %v3082_v31  ;;  %v3114_v34 = vmax.f32 %v6672_v53, %v3092_v13  ;;  %v2902_v36 = vpop.f32.mrb[11].mxu1  ;;  %v3027_v33 = vmax.f32 %v3003_v50, 0.0 }
 0x3a1   : > { %v3025_v17 = vmax.f32 %v3001_v18, 0.0  ;;  %v3004_v16 = vadd.f32 %v4446_v24, %v6653_v12  ;;  %v3002_v5 = vadd.f32 %v6653_v12, %v2902_v36 }
 0x3a2   : > { %v3115_v20 = vmax.f32 %v3091_v6, %v3093_v54  ;;  %v3116_v60 = vmax.f32 %v3092_v13, %v3094_v46  ;;  %v3139_v48 = vpack.c.bf16 %v3114_v34, %v3113_v9  ;;  %v3117_v47 = vmax.f32 %v3093_v54, %v3095_v45 }
 0x3a3   : > { %v3049_v0 = vrot.slane %v3025_v17, 1  ;;  %v3028_v3 = vmax.f32 %v3004_v16, 0.0  ;;  %v3026_v51 = vmax.f32 %v3002_v5, 0.0  ;;  %v3051_v4 = vrot.slane %v3027_v33, 1 }
 0x3a4   : > { %v3140_v32 = vpack.c.bf16 %v3116_v60, %v3115_v20  ;;  %3165 = vmatpush1.bf16.msra.mxu0 %v3139_v48 }
 0x3a5   : > { %v3080_v55 = vsel %vm1560_vm4, %v3048_v56, %v3049_v0  ;;  %v3052_v43 = vrot.slane %v3028_v3, 1  ;;  %v3050_v62 = vrot.slane %v3026_v51, 1  ;;  %v4449_v42 = vpop.f32.mrb[12].mxu1  ;;  %3166 = vmatprep.subr.bf16.mxu0 %v4780_v57 }
 0x3a6   : > { %v3096_v2 = vmax.f32 %v3024_v49, %v3080_v55  ;;  %v3007_v26 = vadd.f32 %v4449_v42, %v6653_v12  ;;  %v2915_v15 = vpop.f32.mrb[13].mxu1 }
 0x3a7   : > { %v3077_v28 = vsel %vm1560_vm4, %v3051_v4, %v3052_v43  ;;  %v3078_v35 = vsel %vm1560_vm4, %v3050_v62, %v3051_v4  ;;  %v3079_v21 = vsel %vm1560_vm4, %v3049_v0, %v3050_v62  ;;  %v3005_v30 = vadd.f32 %v6653_v12, %v2915_v15  ;;  %v4450_v6 = vpop.f32.mrb[14].mxu1 }
 0x3a8   : > { %v3099_v63 = vmax.f32 %v3027_v33, %v3077_v28  ;;  %v3097_v29 = vmax.f32 %v3025_v17, %v3079_v21  ;;  %v3098_v8 = vmax.f32 %v3026_v51, %v3078_v35  ;;  %v3118_v39 = vmax.f32 %v3094_v46, %v3096_v2  ;;  %v2918_v52 = vpop.f32.mrb[15].mxu1  ;;  %3167 = vmatpush1.bf16.msra.mxu0 %v3140_v32 }
 0x3a9   : > { %v3031_v27 = vmax.f32 %v3007_v26, 0.0  ;;  %v3029_v7 = vmax.f32 %v3005_v30, 0.0  ;;  %v3008_v11 = vadd.f32 %v4450_v6, %v6653_v12  ;;  %v3006_v40 = vadd.f32 %v6653_v12, %v2918_v52  ;;  %3168 = vmatprep.subr.bf16.mxu0 %v4780_v57 }
 0x3aa   : > { %v3119_v49 = vmax.f32 %v3095_v45, %v3097_v29  ;;  %v3120_v9 = vmax.f32 %v3096_v2, %v3098_v8  ;;  %v3141_v38 = vpack.c.bf16 %v3118_v39, %v3117_v47  ;;  %v3121_v61 = vmax.f32 %v3097_v29, %v3099_v63 }
 0x3ab   : > { %v3053_v22 = vrot.slane %v3029_v7, 1  ;;  %v3032_v56 = vmax.f32 %v3008_v11, 0.0  ;;  %v3030_v58 = vmax.f32 %v3006_v40, 0.0  ;;  %v3055_v41 = vrot.slane %v3031_v27, 1 }
 0x3ac   : > { %v3142_v59 = vpack.c.bf16 %v3120_v9, %v3119_v49  ;;  %3169 = vmatpush1.bf16.msra.mxu0 %v3141_v38 }
 0x3ad   : > { %v3076_v37 = vsel %vm1560_vm4, %v3052_v43, %v3053_v22  ;;  %v3056_v13 = vrot.slane %v3032_v56, 1  ;;  %v3054_v50 = vrot.slane %v3030_v58, 1  ;;  %v4453_v14 = vpop.f32.mrb[16].mxu1  ;;  %3170 = vmatprep.subr.bf16.mxu0 %v4780_v57 }
 0x3ae   : > { %v3100_v31 = vmax.f32 %v3028_v3, %v3076_v37  ;;  %v3011_v45 = vadd.f32 %v4453_v14, %v6653_v12  ;;  %v2931_v19 = vpop.f32.mrb[17].mxu1 }
 0x3af   : > { %v3073_v18 = vsel %vm1560_vm4, %v3055_v41, %v3056_v13  ;;  %v3074_v24 = vsel %vm1560_vm4, %v3054_v50, %v3055_v41  ;;  %v3075_v54 = vsel %vm1560_vm4, %v3053_v22, %v3054_v50  ;;  %v3009_v46 = vadd.f32 %v6653_v12, %v2931_v19  ;;  %v4454_v34 = vpop.f32.mrb[18].mxu1 }
 0x3b0   : > { %v3103_v36 = vmax.f32 %v3031_v27, %v3073_v18  ;;  %v3101_v33 = vmax.f32 %v3029_v7, %v3075_v54  ;;  %v3102_v17 = vmax.f32 %v3030_v58, %v3074_v24  ;;  %v3122_v16 = vmax.f32 %v3098_v8, %v3100_v31  ;;  %v2934_v5 = vpop.f32.mrb[19].mxu1  ;;  %3171 = vmatpush1.bf16.msra.mxu0 %v3142_v59 }
 0x3b1   : > { %v3035_v20 = vmax.f32 %v3011_v45, 0.0  ;;  %v3033_v60 = vmax.f32 %v3009_v46, 0.0  ;;  %v3012_v48 = vadd.f32 %v4454_v34, %v6653_v12  ;;  %v3010_v0 = vadd.f32 %v6653_v12, %v2934_v5  ;;  %3172 = vmatprep.subr.bf16.mxu0 %v4780_v57 }
 0x3b2   : > { %v3123_v3 = vmax.f32 %v3099_v63, %v3101_v33  ;;  %v3124_v51 = vmax.f32 %v3100_v31, %v3102_v17  ;;  %v3143_v47 = vpack.c.bf16 %v3122_v16, %v3121_v61  ;;  %v3125_v32 = vmax.f32 %v3101_v33, %v3103_v36 }
 0x3b3   : > { %v3057_v4 = vrot.slane %v3033_v60, 1  ;;  %v3036_v55 = vmax.f32 %v3012_v48, 0.0  ;;  %v3034_v43 = vmax.f32 %v3010_v0, 0.0  ;;  %v3059_v42 = vrot.slane %v3035_v20, 1 }
 0x3b4   : > { %v3144_v62 = vpack.c.bf16 %v3124_v51, %v3123_v3  ;;  %3173 = vmatpush1.bf16.msra.mxu0 %v3143_v47 }
 0x3b5   : > { %v3072_v2 = vsel %vm1560_vm4, %v3056_v13, %v3057_v4  ;;  %v3060_v26 = vrot.slane %v3036_v55, 1  ;;  %v3058_v15 = vrot.slane %v3034_v43, 1  ;;  %v4457_v28 = vpop.f32.mrb[20].mxu1  ;;  %3174 = vmatprep.subr.bf16.mxu0 %v4780_v57 }
 0x3b6   : > { %v3104_v35 = vmax.f32 %v3032_v56, %v3072_v2  ;;  %v3015_v21 = vadd.f32 %v4457_v28, %v6653_v12  ;;  %v2947_v30 = vpop.f32.mrb[21].mxu1  ;;  %v4746_v2 = vld [vmem:[%s6923_s6 + $0x78] sm:$0xff]   ;;  %v4757_v28 = vld [vmem:[%s6925_s8 + $0x10] sm:$0xff]  }
 0x3b7   : > { %v3069_v6 = vsel %vm1560_vm4, %v3059_v42, %v3060_v26  ;;  %v3070_v63 = vsel %vm1560_vm4, %v3058_v15, %v3059_v42  ;;  %v3071_v29 = vsel %vm1560_vm4, %v3057_v4, %v3058_v15  ;;  %v3013_v8 = vadd.f32 %v6653_v12, %v2947_v30  ;;  %v4458_v39 = vpop.f32.mrb[22].mxu1  ;;  %v4740_v4 = vld [vmem:[%s6923_s6 + $0x48] sm:$0xff]   ;;  %v4745_v42 = vld [vmem:[%s6923_s6 + $0x70] sm:$0xff]  }
 0x3b8   : > { %v3107_v52 = vmax.f32 %v3035_v20, %v3069_v6  ;;  %v3105_v27 = vmax.f32 %v3033_v60, %v3071_v29  ;;  %v3106_v7 = vmax.f32 %v3034_v43, %v3070_v63  ;;  %v3126_v11 = vmax.f32 %v3102_v17, %v3104_v35  ;;  %v2950_v40 = vpop.f32.mrb[23].mxu1  ;;  %3175 = vmatpush1.bf16.msra.mxu0 %v3144_v62  ;;  %v4743_v43 = vld [vmem:[%s6923_s6 + $0x60] sm:$0xff]   ;;  %v4744_v62 = vld [vmem:[%s6923_s6 + $0x68] sm:$0xff]  }
 0x3b9   : > { %v3039_v49 = vmax.f32 %v3015_v21, 0.0  ;;  %v3037_v9 = vmax.f32 %v3013_v8, 0.0  ;;  %v3016_v38 = vadd.f32 %v4458_v39, %v6653_v12  ;;  %v3014_v61 = vadd.f32 %v6653_v12, %v2950_v40  ;;  %3176 = vmatprep.subr.bf16.mxu0 %v4780_v57  ;;  %v4756_v15 = vld [vmem:[%s6925_s8 + $0x8] sm:$0xff]   ;;  %v4759_v21 = vld [vmem:[%s6925_s8 + $0x20] sm:$0xff]  }
 0x3ba   : > { %v3127_v22 = vmax.f32 %v3103_v36, %v3105_v27  ;;  %v3128_v56 = vmax.f32 %v3104_v35, %v3106_v7  ;;  %v3145_v58 = vpack.c.bf16 %v3126_v11, %v3125_v32  ;;  %v3129_v59 = vmax.f32 %v3105_v27, %v3107_v52  ;;  %v4758_v35 = vld [vmem:[%s6925_s8 + $0x18] sm:$0xff]  }
 0x3bb   : > { %v3061_v41 = vrot.slane %v3037_v9, 1  ;;  %v3040_v37 = vmax.f32 %v3016_v38, 0.0  ;;  %v3038_v13 = vmax.f32 %v3014_v61, 0.0  ;;  %v3063_v14 = vrot.slane %v3039_v49, 1 }
 0x3bc   : > { %v3146_v50 = vpack.c.bf16 %v3128_v56, %v3127_v22  ;;  %3177 = vmatpush1.bf16.msra.mxu0 %v3145_v58  ;;  %v3205_v30 = vmul.u32 16, %v5175_v1  ;;  %v4748_v22 = vld [vmem:[%s6923_s6 + $0x8] sm:$0xff]   ;;  %v4749_v58 = vld [vmem:[%s6923_s6 + $0x10] sm:$0xff]  }
 0x3bd   : > { %v3068_v31 = vsel %vm1560_vm4, %v3060_v26, %v3061_v41  ;;  %v3064_v45 = vrot.slane %v3040_v37, 1  ;;  %v3062_v19 = vrot.slane %v3038_v13, 1  ;;  %3178 = vmatprep.subr.bf16.mxu0 %v4780_v57  ;;  %v4755_v26 = vld [vmem:[%s6925_s8] sm:$0xff]  }
 0x3be   : > { %v3108_v12 = vmax.f32 %v3036_v55, %v3068_v31  ;;  %v4742_v55 = vld [vmem:[%s6923_s6 + $0x58] sm:$0xff]   ;;  %4500 = vmatpush3.bf16.msra.mxu1 %v4755_v26  ;;  %v3207_v6 = vadd.s32 16, %v3205_v30 }
 0x3bf   : > { %v3065_v18 = vsel %vm1560_vm4, %v3063_v14, %v3064_v45  ;;  %v3088_v24 = vsel %vm1560_vm4, %v3064_v45, %v6659_v44  ;;  %v3066_v54 = vsel %vm1560_vm4, %v3062_v19, %v3063_v14  ;;  %v3067_v46 = vsel %vm1560_vm4, %v3061_v41, %v3062_v19  ;;  %4501 = vmatprep.subr.bf16.mxu1 %v4781_v25  ;;  %v4750_v41 = vld [vmem:[%s6923_s6 + $0x18] sm:$0xff]   ;;  %v4752_v14 = vld [vmem:[%s6923_s6 + $0x28] sm:$0xff]   ;;  %v4753_v45 = vld [vmem:[%s6923_s6 + $0x30] sm:$0xff]  }
 0x3c0   : > { %v3111_v34 = vmax.f32 %v3039_v49, %v3065_v18  ;;  %v3112_v36 = vmax.f32 %v3040_v37, %v3088_v24  ;;  %v3109_v33 = vmax.f32 %v3037_v9, %v3067_v46  ;;  %v3110_v17 = vmax.f32 %v3038_v13, %v3066_v54  ;;  %3179 = vmatpush1.bf16.msra.mxu0 %v3146_v50  ;;  %v4751_v13 = vld [vmem:[%s6923_s6 + $0x20] sm:$0xff]   ;;  %v4760_v54 = vld [vmem:[%s6925_s8 + $0x28] sm:$0xff]   ;;  %v4761_v46 = vld [vmem:[%s6925_s8 + $0x30] sm:$0xff]  }
 0x3c1   : > { %v3130_v16 = vmax.f32 %v3106_v7, %v3108_v12  ;;  %3180 = vmatprep.subr.bf16.mxu0 %v4780_v57  ;;  %vm3206_vm4 = vcmp.ge.s32.totalorder %v5164_v10, %v3205_v30  ;;  %vm3208_vm5 = vcmp.lt.s32.totalorder %v5164_v10, %v3207_v6  ;;  %v4747_v10 = vld [vmem:[%s6923_s6] sm:$0xff]  }
 0x3c2   : > { %v3135_v5 = vmax.f32 %v3111_v34, %v6670_v23  ;;  %v3136_v20 = vmax.f32 %v3112_v36, %v6672_v53  ;;  %v3131_v60 = vmax.f32 %v3107_v52, %v3109_v33  ;;  %v3132_v44 = vmax.f32 %v3108_v12, %v3110_v17  ;;  %v4736_v23 = vld [vmem:[%s6922_s5] ss:$8 sps:$4 sm:$0xff]   ;;  %4502 = vmatpush3.bf16.msra.mxu1 %v4756_v15  ;;  %vm6813_vm6 = vmand %vm3206_vm4, %vm3208_vm5  ;;  %v4754_v12 = vld [vmem:[%s6923_s6 + $0x38] sm:$0xff]  }
 0x3c3   : > { %v3133_v48 = vmax.f32 %v3109_v33, %v3111_v34  ;;  %v3134_v0 = vmax.f32 %v3110_v17, %v3112_v36  ;;  %v3147_v3 = vpack.c.bf16 %v3130_v16, %v3129_v59  ;;  %v4739_v53 = vld [vmem:[%s6923_s6 + $0x40] sm:$0xff]   ;;  %4503 = vmatprep.subr.bf16.mxu1 %v4781_v25  ;;  %v4762_v34 = vld [vmem:[%s6925_s8 + $0x38] sm:$0xff]   ;;  %v4764_v33 = vld [vmem:[%s6927_s10 + $0x8] sm:$0xff]  }
 0x3c4   : > { %v3150_v51 = vpack.c.bf16 %v3136_v20, %v3135_v5  ;;  %v3148_v47 = vpack.c.bf16 %v3132_v44, %v3131_v60  ;;  %v4763_v36 = vld [vmem:[%s6927_s10] sm:$0xff]   ;;  %v4765_v17 = vld [vmem:[%s6927_s10 + $0x10] sm:$0xff]   ;;  %v4766_v16 = vld [vmem:[%s6927_s10 + $0x18] sm:$0xff]  }
 0x3c5   : > { %v3149_v32 = vpack.c.bf16 %v3134_v0, %v3133_v48  ;;  %3181 = vmatpush1.bf16.msra.mxu0 %v3147_v3  ;;  %v4767_v5 = vld [vmem:[%s6927_s10 + $0x20] sm:$0xff]   ;;  %v4768_v20 = vld [vmem:[%s6927_s10 + $0x28] sm:$0xff]  }
 0x3c6   : > { %3182 = vmatprep.subr.bf16.mxu0 %v4780_v57  ;;  %4504 = vmatpush3.bf16.msra.mxu1 %v4757_v28  ;;  %v3562_v6 = vld [vmem:[%s6928_s11] sm:$0x1] }
 0x3c7   : > { %4505 = vmatprep.subr.bf16.mxu1 %v4781_v25 }
 0x3c9   : > { %3183 = vmatpush1.bf16.msra.mxu0 %v3148_v47 }
 0x3ca   : > { %3184 = vmatprep.subr.bf16.mxu0 %v4780_v57  ;;  %4506 = vmatpush3.bf16.msra.mxu1 %v4758_v35 }
 0x3cb   : > { %4507 = vmatprep.subr.bf16.mxu1 %v4781_v25 }
 0x3cd   : > { %3185 = vmatpush1.bf16.msra.mxu0 %v3149_v32 }
 0x3ce   : > { %3186 = vmatprep.subr.bf16.mxu0 %v4780_v57  ;;  %v4741_v57 = vld [vmem:[%s6923_s6 + $0x50] sm:$0xff]   ;;  %4508 = vmatpush3.bf16.msra.mxu1 %v4759_v21 }
 0x3cf   : > { %4509 = vmatprep.subr.bf16.mxu1 %v4781_v25 }
 0x3d1   : > { %3187 = vmatpush1.bf16.msra.mxu0 %v3150_v51  ;;  %v3435_v51 = vld [vmem:[%s6924_s7] sm:$0x1] }
 0x3d2   : > { %4459 = vmatprep.subr.bf16.mxu0 %v4781_v25  ;;  %4510 = vmatpush3.bf16.msra.mxu1 %v4760_v54 }
 0x3d3   : > { %4511 = vmatprep.subr.bf16.mxu1 %v4781_v25 }
 0x3d4   : > { %3197 = vmatmul.mubr.bf16.vlgmr.msra.gmra.mrb[96].mxu0 %v4736_v23 }
 0x3d5   : > { %4460 = vmatpush3.bf16.msra.mxu0 %v4739_v53  ;;  %4475 = vmatprep.mubr.msk.bf16.mxu0 %vm4782_vm3, %v4781_v25 }
 0x3d6   : > { %4461 = vmatprep.subr.bf16.mxu0 %v4781_v25  ;;  %4512 = vmatpush3.bf16.msra.mxu1 %v4761_v46 }
 0x3d7   : > { %4513 = vmatprep.subr.bf16.mxu1 %v4781_v25 }
 0x3d9   : > { %4462 = vmatpush3.bf16.msra.mxu0 %v4740_v4 }
 0x3da   : > { %4463 = vmatprep.subr.bf16.mxu0 %v4781_v25  ;;  %4514 = vmatpush3.bf16.msra.mxu1 %v4762_v34 }
 0x3dd   : > { %4464 = vmatpush3.bf16.msra.mxu0 %v4741_v57 }
 0x3de   : > { %4465 = vmatprep.subr.bf16.mxu0 %v4781_v25 }
 0x3e1   : > { %4466 = vmatpush3.bf16.msra.mxu0 %v4742_v55 }
 0x3e2   : > { %4467 = vmatprep.subr.bf16.mxu0 %v4781_v25 }
 0x3e5   : > { %4468 = vmatpush3.bf16.msra.mxu0 %v4743_v43  ;;  %v4769_v43 = vld [vmem:[%s6927_s10 + $0x30] sm:$0xff]  }
 0x3e6   : > { %4469 = vmatprep.subr.bf16.mxu0 %v4781_v25 }
 0x3e9   : > { %4470 = vmatpush3.bf16.msra.mxu0 %v4744_v62  ;;  %v4770_v62 = vld [vmem:[%s6927_s10 + $0x38] sm:$0xff]  }
 0x3ea   : > { %4471 = vmatprep.subr.bf16.mxu0 %v4781_v25 }
 0x3ed   : > { %4472 = vmatpush3.bf16.msra.mxu0 %v4745_v42  ;;  %v3455_v42 = vld [vmem:[%s6926_s9] sm:$0x1] }
 0x3ee   : > { %4473 = vmatprep.subr.bf16.mxu0 %v4781_v25 }
 0x3f1   : > { %4474 = vmatpush3.bf16.msra.mxu0 %v4746_v2 }
 0x3f2   : > { %4479 = vmatprep.subr.bf16.mxu0 %v4781_v25 }
 0x4a7   : > { %v3198_v63 = vpop.f32.mrb[96].mxu0 }
 0x4a8   : > { %v3200_v29 = vpop.f32.mrb[97].mxu0  ;;  %v3210_v56 = vsel %vm6813_vm6, %v3198_v63, 0.0 }
 0x4a9   : > { %v3201_v39 = vpop.f32.mrb[98].mxu0  ;;  %v3211_v59 = vrot.slane %v3210_v56, 4 }
 0x4aa   : > { %v3217_v52 = vsel %vm6813_vm6, %v3201_v39, 0.0  ;;  %v3203_v27 = vpop.f32.mrb[99].mxu0 }
 0x4ab   : > { %v3218_v7 = vrot.slane %v3217_v52, 4  ;;  %v3212_v37 = vadd.f32 %v3211_v59, %v3210_v56 }
 0x4ad   : > { %v3219_v11 = vadd.f32 %v3218_v7, %v3217_v52  ;;  %v3213_v50 = vrot.slane %v3212_v37, 2 }
 0x4af   : > { %v3220_v40 = vrot.slane %v3219_v11, 2  ;;  %v3214_v31 = vadd.f32 %v3213_v50, %v3212_v37 }
 0x4b1   : > { %v3221_v49 = vadd.f32 %v3220_v40, %v3219_v11  ;;  %v3215_v19 = vrot.slane %v3214_v31, 1 }
 0x4b3   : > { %v3222_v9 = vrot.slane %v3221_v49, 1  ;;  %v3216_v18 = vadd.f32 %v3215_v19, %v3214_v31 }
 0x4b5   : > { %v3223_v38 = vadd.f32 %v3222_v9, %v3221_v49  ;;  %v3224_v24 = vpack.c.bf16 %v3216_v18, %v3216_v18 }
 0x4b7   : > { %v3241_v61 = vpack.c.bf16 %v3223_v38, %v3223_v38 }
 0x4b9   : > { %4476 = vmatmul.mubr.bf16.vlgmr.msra.gmra.mrb[100].mxu0 %v3241_v61 }
 0x4ba   : > { %4480 = vmatpush3.bf16.msra.mxu0 %v4747_v10  ;;  %4495 = vmatprep.mubr.msk.bf16.mxu0 %vm4782_vm3, %v4781_v25 }
 0x4bb   : > { %4481 = vmatprep.subr.bf16.mxu0 %v4781_v25 }
 0x4be   : > { %4482 = vmatpush3.bf16.msra.mxu0 %v4748_v22 }
 0x4bf   : > { %4483 = vmatprep.subr.bf16.mxu0 %v4781_v25 }
 0x4c2   : > { %4484 = vmatpush3.bf16.msra.mxu0 %v4749_v58 }
 0x4c3   : > { %4485 = vmatprep.subr.bf16.mxu0 %v4781_v25 }
 0x4c6   : > { %4486 = vmatpush3.bf16.msra.mxu0 %v4750_v41 }
 0x4c7   : > { %4487 = vmatprep.subr.bf16.mxu0 %v4781_v25 }
 0x4ca   : > { %4488 = vmatpush3.bf16.msra.mxu0 %v4751_v13 }
 0x4cb   : > { %4489 = vmatprep.subr.bf16.mxu0 %v4781_v25 }
 0x4ce   : > { %4490 = vmatpush3.bf16.msra.mxu0 %v4752_v14 }
 0x4cf   : > { %4491 = vmatprep.subr.bf16.mxu0 %v4781_v25 }
 0x4d2   : > { %4492 = vmatpush3.bf16.msra.mxu0 %v4753_v45 }
 0x4d3   : > { %4493 = vmatprep.subr.bf16.mxu0 %v4781_v25 }
 0x4d6   : > { %4494 = vmatpush3.bf16.msra.mxu0 %v4754_v12 }
 0x4d7   : > { %4519 = vmatprep.subr.bf16.mxu0 %v4781_v25 }
 0x4d9   : > { %4496 = vmatmul.mubr.bf16.vlgmr.msra.gmra.mrb[104].mxu0 %v3224_v24 }
 0x4da   : > { %4535 = vmatprep.mubr.msk.bf16.mxu0 %vm4782_vm3, %v4781_v25  ;;  %4520 = vmatpush3.bf16.msra.mxu0 %v4763_v36 }
 0x4db   : > { %4521 = vmatprep.subr.bf16.mxu0 %v4781_v25 }
 0x4de   : > { %4522 = vmatpush3.bf16.msra.mxu0 %v4764_v33 }
 0x4df   : > { %4523 = vmatprep.subr.bf16.mxu0 %v4781_v25 }
 0x4e2   : > { %4524 = vmatpush3.bf16.msra.mxu0 %v4765_v17 }
 0x4e3   : > { %4525 = vmatprep.subr.bf16.mxu0 %v4781_v25 }
 0x4e6   : > { %4526 = vmatpush3.bf16.msra.mxu0 %v4766_v16 }
 0x4e7   : > { %4527 = vmatprep.subr.bf16.mxu0 %v4781_v25 }
 0x4ea   : > { %4528 = vmatpush3.bf16.msra.mxu0 %v4767_v5 }
 0x4eb   : > { %4529 = vmatprep.subr.bf16.mxu0 %v4781_v25 }
 0x4ee   : > { %4530 = vmatpush3.bf16.msra.mxu0 %v4768_v20 }
 0x4ef   : > { %4531 = vmatprep.subr.bf16.mxu0 %v4781_v25 }
 0x4f2   : > { %4532 = vmatpush3.bf16.msra.mxu0 %v4769_v43 }
 0x4f3   : > { %4533 = vmatprep.subr.bf16.mxu0 %v4781_v25  ;;  %v3653_v25 = vsub.s32 0, %v5175_v1 }
 0x4f6   : > { %4534 = vmatpush3.bf16.msra.mxu0 %v4770_v62 }
 0x58c   : > { %v3341_v60 = vpop.f32.mrb[100].mxu0 }
 0x58d   : > { %v4477_v44 = vpop.f32.mrb[101].mxu0 }
 0x58e   : > { %v3344_v48 = vpop.f32.mrb[102].mxu0 }
 0x58f   : > { %v4478_v0 = vpop.f32.mrb[103].mxu0 }
 0x5ac   : > { %v3429_v3 = vpop.f32.mrb[104].mxu0 }
 0x5ad   : > { %v3430_v47 = vadd.f32 %v3429_v3, %v3341_v60  ;;  %v4497_v32 = vpop.f32.mrb[105].mxu0 }
 0x5ae   : > { %v3432_v23 = vpop.f32.mrb[106].mxu0 }
 0x5af   : > { %v3436_v53 = vadd.f32 %v3435_v51, %v3430_v47  ;;  %v4498_v4 = vpop.f32.mrb[107].mxu0 }
 0x5b1   : > { %v3437_v57 = vmax.f32 %v3436_v53, 0.0 }
 0x5b3   : > { %v3438_v55 = vpack.c.bf16 %v3437_v57, %v3437_v57 }
 0x5b5   : > { %4516 = vmatmul.mubr.bf16.vlgmr.msra.gmra.mrb[24].mxu1 %v3438_v55 }
 0x688   : > { %v3538_v2 = vpop.f32.mrb[24].mxu1 }
 0x689   : > { %v3539_v26 = vadd.f32 %v3538_v2, %v3455_v42  ;;  %v4517_v15 = vpop.f32.mrb[25].mxu1 }
 0x68a   : > { %v3541_v28 = vpop.f32.mrb[26].mxu1 }
 0x68b   : > { %v3544_v35 = vmax.f32 %v3539_v26, 0.0  ;;  %v4518_v21 = vpop.f32.mrb[27].mxu1 }
 0x68d   : > { %v3545_v30 = vpack.c.bf16 %v3544_v35, %v3544_v35 }
 0x68f   : > { %4536 = vmatmul.mubr.bf16.vlgmr.msra.gmra.mrb[108].mxu0 %v3545_v30 }
 0x762   : > { %v3645_v63 = vpop.f32.mrb[108].mxu0 }
 0x763   : > { %v3646_v29 = vadd.f32 %v3645_v63, %v3562_v6  ;;  %v4537_v8 = vpop.f32.mrb[109].mxu0 }
 0x764   : > { %v3648_v39 = vpop.f32.mrb[110].mxu0 }
 0x765   : > { %v3654_v52 = vrot.slane %v3646_v29, %v3653_v25  ;;  %v4538_v27 = vpop.f32.mrb[111].mxu0 }
 0x767   : > { %3655 = vst [vmem:[%s413_s17] sm:$0xff] %v3654_v52 }
 0x768 PF: > { %s22_s21 = sadd.s32 1, %s4778_s21  }
 0x769   : > { %p19_p5 = scmp.ge.s32.totalorder %s22_s21, 4  }
 0x76b   :  { %21 = sbr.rel (!%p19_p5) target bundleno = 1 (0x1), region = 103 }

</bundles_post_ra>
